<compile_context>
chip_gen: v7x
topology: tpu7x:2x2x1
jax: 0.10.0
libtpu: 0.0.40
codegen_flags: <defaults>
</compile_context>

<pallas_src>
import functools

import jax
import jax.numpy as jnp
from jax import lax
from jax.experimental import pallas as pl
from jax.experimental.pallas import tpu as pltpu

K = 3            # Conv1d kernel size
F_CONV = 512     # conv output channels
HID = 256        # MLP hidden width
OUT_PAD = 128    # lane-dense padded classifier output width (>= num_class)
TB = 8           # batch tile (sublane-aligned)
MAX_TL = 512     # max length tile (rows per grid step)
NEG_BIG = float(jnp.finfo(jnp.float32).min)


# ----------------------------------------------------------------------------
# Fused kernel: conv(+running max-pool) over the (b, l) grid, head at l == last
# ----------------------------------------------------------------------------
def fused_error_net_kernel(x_ref, state_ref,
                           wconv_ref, bconv_ref,
                           we1_ref, be1_ref,
                           wef_ref, wc1b_ref, bcf_ref,
                           wo_ref, bo_ref,
                           o_ref, maxacc_ref, *, l_valid):
    li = pl.program_id(1)
    tb, tl, kc = x_ref.shape
    f32, bf16 = jnp.float32, jnp.bfloat16

    # ---- Conv1d(C,512,k=3,p=1) as ONE im2col matmul for this (TB, TL) tile ----
    xk = x_ref[...].reshape(tb * tl, kc).astype(bf16)            # TL mult-of-8 -> copy-free
    conv = jnp.dot(xk, wconv_ref[...], preferred_element_type=f32)   # (TB*TL, 512)
    conv = conv.reshape(tb, tl, F_CONV)

    if l_valid is not None:
        # Only emitted when L was padded: mask padded rows out of the max.
        row = li * tl + lax.broadcasted_iota(jnp.int32, (1, tl, 1), 1)
        conv = jnp.where(row < l_valid, conv, NEG_BIG)

    # ---- AdaptiveMaxPool1d(1): running max over L tiles (bias/ReLU deferred) ----
    blk_max = jnp.max(conv, axis=1)                              # (TB, 512)

    @pl.when(li == 0)
    def _():
        maxacc_ref[...] = jnp.full(maxacc_ref.shape, NEG_BIG, jnp.float32)

    maxacc_ref[...] = jnp.maximum(maxacc_ref[...], blk_max)

    # ---- head: runs once per batch tile, after the last L tile ----
    @pl.when(li == pl.num_programs(1) - 1)
    def _():
        # bias + ReLU after the pool (exact: bias const over L, ReLU monotone)
        pooled = jnp.maximum(maxacc_ref[...] + bconv_ref[...], 0.0)      # (TB, 512)

        # expanding Linear(2, 256) + ReLU on the VPU (contraction depth 2)
        s = state_ref[...]                                               # (TB, 2) f32
        h = jnp.maximum(s[:, 0:1] * we1_ref[0:1, :]
                        + s[:, 1:2] * we1_ref[1:2, :]
                        + be1_ref[...], 0.0)                             # (TB, 256)

        # classifier Linear(1024, 256): expanding Linear(256,512) folded into wef/bcf,
        # wc1b acts on the pooled half of the concat.
        z = (jnp.dot(h.astype(bf16), wef_ref[...], preferred_element_type=f32)
             + jnp.dot(pooled.astype(bf16), wc1b_ref[...], preferred_element_type=f32)
             + bcf_ref[...])
        z = jnp.maximum(z, 0.0)                                          # (TB, 256)

        # Linear(256, num_class) (lane-padded to 128) -> sigmoid * 2
        logits = jnp.dot(z.astype(bf16), wo_ref[...], preferred_element_type=f32) + bo_ref[...]
        o_ref[...] = (jax.nn.sigmoid(logits) * 2.0).astype(o_ref.dtype)


# ----------------------------------------------------------------------------
# Wrapper
# ----------------------------------------------------------------------------
def error_net_forward(observation, state, params, num_class=11,
                      max_tl=MAX_TL, vmem_limit_bytes=32 * 1024 * 1024):
    """observation: (B, C, L) f32 (PyTorch Conv1d NCL layout); state: (B, 2) f32."""
    B, C, L = observation.shape
    KC = K * C

    # Single wrapper-side prep pass (fuses in XLA): NCL->NLC, pad(1,1), im2col
    # concat along lanes, then tile padding.
    x_nlc = jnp.transpose(observation, (0, 2, 1))                       # (B, L, C)
    xp = jnp.pad(x_nlc, ((0, 0), (1, 1), (0, 0)))                       # (B, L+2, C)
    x_im2col = jnp.concatenate([xp[:, k:k + L, :] for k in range(K)], axis=-1)  # (B, L, K*C)

    B_pad = pl.cdiv(B, TB) * TB
    TL = min(max_tl, pl.cdiv(L, 8) * 8)                                 # 8-aligned L tile
    L_pad = pl.cdiv(L, TL) * TL
    if (B_pad, L_pad) != (B, L):
        x_im2col = jnp.pad(x_im2col, ((0, B_pad - B), (0, L_pad - L), (0, 0)))
    state_p = jnp.pad(state, ((0, B_pad - B), (0, 0))) if B_pad != B else state
    nb, nl = B_pad // TB, L_pad // TL

    inputs = (x_im2col, state_p,
              params["w_conv"], params["b_conv"],
              params["we1"], params["be1"],
              params["wef"], params["wc1b"], params["bcf"],
              params["wo"], params["bo"])

    kernel = functools.partial(fused_error_net_kernel,
                               l_valid=(L if L_pad != L else None))

    grid_spec = pltpu.PrefetchScalarGridSpec(
        num_scalar_prefetch=0,
        grid=(nb, nl),
        in_specs=[
            pl.BlockSpec((TB, TL, KC), lambda b, l: (b, l, 0)),          # im2col input
            pl.BlockSpec((TB, 2), lambda b, l: (b, 0)),                  # state
            pl.BlockSpec((KC, F_CONV), lambda b, l: (0, 0)),             # conv weight slab
            pl.BlockSpec((1, F_CONV), lambda b, l: (0, 0)),              # conv bias
            pl.BlockSpec((2, HID), lambda b, l: (0, 0)),                 # we1
            pl.BlockSpec((1, HID), lambda b, l: (0, 0)),                 # be1
            pl.BlockSpec((HID, HID), lambda b, l: (0, 0)),               # wef (folded)
            pl.BlockSpec((F_CONV, HID), lambda b, l: (0, 0)),            # wc1b
            pl.BlockSpec((1, HID), lambda b, l: (0, 0)),                 # bcf (folded)
            pl.BlockSpec((HID, OUT_PAD), lambda b, l: (0, 0)),           # wo (lane padded)
            pl.BlockSpec((1, OUT_PAD), lambda b, l: (0, 0)),             # bo (lane padded)
        ],
        out_specs=pl.BlockSpec((TB, OUT_PAD), lambda b, l: (b, 0)),
        scratch_shapes=[pltpu.VMEM((TB, F_CONV), jnp.float32)],          # running max
    )

    flops = 2 * B_pad * (L_pad * KC * F_CONV        # im2col conv matmul
                         + HID * HID                # folded we2@wc1a path
                         + F_CONV * HID             # pooled half of classifier
                         + HID * OUT_PAD)           # padded output Linear
    bytes_accessed = int(sum(int(a.size) * int(a.dtype.itemsize) for a in inputs)
                         + B_pad * OUT_PAD * 4)

    out_pad = pl.pallas_call(
        kernel,
        out_shape=jax.ShapeDtypeStruct((B_pad, OUT_PAD), jnp.float32),
        grid_spec=grid_spec,
        compiler_params=pltpu.CompilerParams(
            dimension_semantics=("parallel", "arbitrary"),
            vmem_limit_bytes=vmem_limit_bytes),
        cost_estimate=pl.CostEstimate(
            flops=int(flops),
            transcendentals=int(B_pad * OUT_PAD),
            bytes_accessed=bytes_accessed),
    )(*inputs)
    return out_pad[:B, :num_class]


# ----------------------------------------------------------------------------
# Parameters: raw f32 (PyTorch-equivalent layout) + kernel-prepped
# ----------------------------------------------------------------------------
def init_params(key, c_in, num_class=11):
    ks = jax.random.split(key, 11)
    scale = 0.05
    f32 = jnp.float32
    return {
        # Conv1d(C, 512, k=3) weight stored as (K, C, 512): w_conv[k, c, f] == W_pt[f, c, k]
        "w_conv": scale * jax.random.normal(ks[0], (K, c_in, F_CONV), f32),
        "b_conv": scale * jax.random.normal(ks[1], (1, F_CONV), f32),
        # expanding: Linear(2,256), Linear(256,512) -- stored (in, out)
        "we1": scale * jax.random.normal(ks[2], (2, HID), f32),
        "be1": scale * jax.random.normal(ks[3], (1, HID), f32),
        "we2": scale * jax.random.normal(ks[4], (HID, F_CONV), f32),
        "be2": scale * jax.random.normal(ks[5], (1, F_CONV), f32),
        # classifier Linear(1024,256) split into expanding-half / pooled-half blocks
        "wc1a": scale * jax.random.normal(ks[6], (F_CONV, HID), f32),
        "wc1b": scale * jax.random.normal(ks[7], (F_CONV, HID), f32),
        "bc1": scale * jax.random.normal(ks[8], (1, HID), f32),
        "wc2": scale * jax.random.normal(ks[9], (HID, num_class), f32),
        "bc2": scale * jax.random.normal(ks[10], (1, num_class), f32),
    }


def prepare_params(raw, num_class=11):
    """Flatten conv weight to one (K*C, 512) im2col slab, fold we2@wc1a (exact),
    lane-pad the output Linear to 128, cast MXU weights to bf16 (VPU path stays f32)."""
    bf16 = jnp.bfloat16
    kc = raw["w_conv"].shape[0] * raw["w_conv"].shape[1]
    w_conv = raw["w_conv"].reshape(kc, F_CONV)                 # (K*C, 512), (k,c) row-major
    wef = raw["we2"] @ raw["wc1a"]                             # (256, 256), folded in f32
    bcf = raw["be2"] @ raw["wc1a"] + raw["bc1"]                # (1, 256)
    wo = jnp.zeros((HID, OUT_PAD), jnp.float32).at[:, :num_class].set(raw["wc2"])
    bo = jnp.zeros((1, OUT_PAD), jnp.float32).at[:, :num_class].set(raw["bc2"])
    return {
        "w_conv": w_conv.astype(bf16),
        "b_conv": raw["b_conv"],
        "we1": raw["we1"],          # stays f32: computed on the VPU
        "be1": raw["be1"],
        "wef": wef.astype(bf16),
        "wc1b": raw["wc1b"].astype(bf16),
        "bcf": bcf,
        "wo": wo.astype(bf16),
        "bo": bo,
    }


# ----------------------------------------------------------------------------
# Pure-JAX f32 reference matching the PyTorch forward (for correctness check)
# ----------------------------------------------------------------------------
def error_net_reference(observation, state, raw, num_class=11):
    B, C, L = observation.shape
    xp = jnp.pad(jnp.transpose(observation, (0, 2, 1)), ((0, 0), (1, 1), (0, 0)))
    conv = raw["b_conv"]
    for k in range(K):
        conv = conv + jnp.einsum("blc,cf->blf", xp[:, k:k + L, :], raw["w_conv"][k])
    feat = jnp.maximum(conv, 0.0)
    pooled = jnp.max(feat, axis=1)                                  # AdaptiveMaxPool1d(1)
    h = jnp.maximum(state @ raw["we1"] + raw["be1"], 0.0)
    e = h @ raw["we2"] + raw["be2"]                                 # (B, 512)
    cat = jnp.concatenate([e, pooled], axis=1)                      # (B, 1024)
    wc1 = jnp.concatenate([raw["wc1a"], raw["wc1b"]], axis=0)       # (1024, 256)
    z = jnp.maximum(cat @ wc1 + raw["bc1"], 0.0)
    logits = z @ raw["wc2"] + raw["bc2"]
    return jax.nn.sigmoid(logits) * 2.0


if __name__ == "__main__":
    key = jax.random.PRNGKey(0)
    k_obs, k_state, k_param = jax.random.split(key, 3)

    B, C, L = 2, 4, 16
    num_class = 11

    observation = jax.random.normal(k_obs, (B, C, L), jnp.float32)   # NCL (PyTorch Conv1d)
    state = jax.random.normal(k_state, (B, 2), jnp.float32)

    raw = init_params(k_param, C, num_class)
    params = prepare_params(raw, num_class)

    out = error_net_forward(observation, state, params, num_class)
    out = jax.block_until_ready(out)

    assert out.shape == (B, num_class), out.shape
    assert bool(jnp.all(out >= 0.0)) and bool(jnp.all(out <= 2.0))   # sigmoid * 2 range

    ref = error_net_reference(observation, state, raw, num_class)
    assert bool(jnp.allclose(out, ref, atol=5e-2, rtol=5e-2)), (
        "max abs diff vs reference: %f" % float(jnp.max(jnp.abs(out - ref))))

    print("KERNEL_OK")
</pallas_src>

<mosaic_0001>
module attributes {stable_mosaic.version = 11 : i64} {
  func.func @fused_error_net_kernel(%arg0: i32, %arg1: i32, %arg2: memref<8x16x12xf32, #tpu.memory_space<vmem>>, %arg3: memref<8x2xf32, #tpu.memory_space<vmem>>, %arg4: memref<12x512xbf16, #tpu.memory_space<vmem>>, %arg5: memref<1x512xf32, #tpu.memory_space<vmem>>, %arg6: memref<2x256xf32, #tpu.memory_space<vmem>>, %arg7: memref<1x256xf32, #tpu.memory_space<vmem>>, %arg8: memref<256x256xbf16, #tpu.memory_space<vmem>>, %arg9: memref<512x256xbf16, #tpu.memory_space<vmem>>, %arg10: memref<1x256xf32, #tpu.memory_space<vmem>>, %arg11: memref<256x128xbf16, #tpu.memory_space<vmem>>, %arg12: memref<1x128xf32, #tpu.memory_space<vmem>>, %arg13: memref<8x128xf32, #tpu.memory_space<vmem>>, %arg14: memref<8x512xf32, #tpu.memory_space<vmem>>) attributes {dimension_semantics = [#tpu.dimension_semantics<parallel>, #tpu.dimension_semantics<arbitrary>], iteration_bounds = array<i64: 1, 1>, scalar_prefetch = 0 : i64, scratch_operands = 1 : i64, tpu.core_type = #tpu.core_type<tc>, window_params = [{transform_indices = @transform_0, window_bounds = array<i64: 8, 16, 12>}, {transform_indices = @transform_1, window_bounds = array<i64: 8, 2>}, {pipeline_mode = #tpu.pipeline_mode<synchronous>, transform_indices = @transform_2, window_bounds = array<i64: 12, 512>}, {pipeline_mode = #tpu.pipeline_mode<synchronous>, transform_indices = @transform_3, window_bounds = array<i64: 1, 512>}, {pipeline_mode = #tpu.pipeline_mode<synchronous>, transform_indices = @transform_4, window_bounds = array<i64: 2, 256>}, {pipeline_mode = #tpu.pipeline_mode<synchronous>, transform_indices = @transform_5, window_bounds = array<i64: 1, 256>}, {pipeline_mode = #tpu.pipeline_mode<synchronous>, transform_indices = @transform_6, window_bounds = array<i64: 256, 256>}, {pipeline_mode = #tpu.pipeline_mode<synchronous>, transform_indices = @transform_7, window_bounds = array<i64: 512, 256>}, {pipeline_mode = #tpu.pipeline_mode<synchronous>, transform_indices = @transform_8, window_bounds = array<i64: 1, 256>}, {pipeline_mode = #tpu.pipeline_mode<synchronous>, transform_indices = @transform_9, window_bounds = array<i64: 256, 128>}, {pipeline_mode = #tpu.pipeline_mode<synchronous>, transform_indices = @transform_10, window_bounds = array<i64: 1, 128>}, {transform_indices = @transform_11, window_bounds = array<i64: 8, 128>}]} {
    %c0 = arith.constant 0 : index
    %c0_0 = arith.constant 0 : index
    %c0_1 = arith.constant 0 : index
    %0 = vector.load %arg2[%c0, %c0_0, %c0_1] : memref<8x16x12xf32, #tpu.memory_space<vmem>>, vector<8x16x12xf32>
    %1 = vector.shape_cast %0 : vector<8x16x12xf32> to vector<128x12xf32>
    %2 = arith.truncf %1 : vector<128x12xf32> to vector<128x12xbf16>
    %c0_2 = arith.constant 0 : index
    %c0_3 = arith.constant 0 : index
    %3 = vector.load %arg4[%c0_2, %c0_3] : memref<12x512xbf16, #tpu.memory_space<vmem>>, vector<12x512xbf16>
    %cst = arith.constant dense<0.000000e+00> : vector<128x512xf32>
    %4 = tpu.matmul %2, %3, %cst {dimension_numbers = #tpu.dot_dimension_numbers<[1], [0], [0], [1], [0, 0, 1, 1], [], []>} : vector<128x12xbf16>, vector<12x512xbf16>, vector<128x512xf32> -> vector<128x512xf32>
    %5 = vector.shape_cast %4 : vector<128x512xf32> to vector<8x16x512xf32>
    %cst_4 = arith.constant dense<0xFF800000> : vector<8x512xf32>
    %6 = vector.multi_reduction <maximumf>, %5, %cst_4 [1] : vector<8x16x512xf32> to vector<8x512xf32>
    %c0_i32 = arith.constant 0 : i32
    %7 = arith.cmpi eq, %arg1, %c0_i32 : i32
    %8 = arith.extui %7 : i1 to i32
    %c0_i32_5 = arith.constant 0 : i32
    %9 = arith.cmpi ne, %8, %c0_i32_5 : i32
    scf.if %9 {
      %cst_12 = arith.constant -3.40282347E+38 : f32
      %16 = vector.broadcast %cst_12 : f32 to vector<8x512xf32>
      %c0_13 = arith.constant 0 : index
      %c0_14 = arith.constant 0 : index
      %17 = vector.load %arg14[%c0_13, %c0_14] : memref<8x512xf32, #tpu.memory_space<vmem>>, vector<8x512xf32>
      tpu.vector_store %arg14[%c0_13, %c0_14], %16 {strides = array<i32>} : memref<8x512xf32, #tpu.memory_space<vmem>>, vector<8x512xf32>,
    } else {
    }
    %c0_6 = arith.constant 0 : index
    %c0_7 = arith.constant 0 : index
    %10 = vector.load %arg14[%c0_6, %c0_7] : memref<8x512xf32, #tpu.memory_space<vmem>>, vector<8x512xf32>
    %11 = arith.maximumf %10, %6 : vector<8x512xf32>
    %c0_8 = arith.constant 0 : index
    %c0_9 = arith.constant 0 : index
    %12 = vector.load %arg14[%c0_8, %c0_9] : memref<8x512xf32, #tpu.memory_space<vmem>>, vector<8x512xf32>
    tpu.vector_store %arg14[%c0_8, %c0_9], %11 {strides = array<i32>} : memref<8x512xf32, #tpu.memory_space<vmem>>, vector<8x512xf32>,
    %c0_i32_10 = arith.constant 0 : i32
    %13 = arith.cmpi eq, %arg1, %c0_i32_10 : i32
    %14 = arith.extui %13 : i1 to i32
    %c0_i32_11 = arith.constant 0 : i32
    %15 = arith.cmpi ne, %14, %c0_i32_11 : i32
    scf.if %15 {
      %c0_12 = arith.constant 0 : index
      %c0_13 = arith.constant 0 : index
      %16 = vector.load %arg14[%c0_12, %c0_13] : memref<8x512xf32, #tpu.memory_space<vmem>>, vector<8x512xf32>
      %c0_14 = arith.constant 0 : index
      %c0_15 = arith.constant 0 : index
      %17 = vector.load %arg5[%c0_14, %c0_15] : memref<1x512xf32, #tpu.memory_space<vmem>>, vector<1x512xf32>
      %18 = vector.broadcast %17 : vector<1x512xf32> to vector<8x512xf32>
      %19 = arith.addf %16, %18 : vector<8x512xf32>
      %cst_16 = arith.constant 0.000000e+00 : f32
      %20 = vector.broadcast %cst_16 : f32 to vector<8x512xf32>
      %21 = arith.maximumf %19, %20 : vector<8x512xf32>
      %c0_17 = arith.constant 0 : index
      %c0_18 = arith.constant 0 : index
      %22 = vector.load %arg3[%c0_17, %c0_18] : memref<8x2xf32, #tpu.memory_space<vmem>>, vector<8x2xf32>
      %23 = vector.extract_strided_slice %22 {offsets = [0, 0], sizes = [8, 1], strides = [1, 1]} : vector<8x2xf32> to vector<8x1xf32>
      %c0_19 = arith.constant 0 : index
      %c0_20 = arith.constant 0 : index
      %24 = vector.load %arg6[%c0_19, %c0_20] : memref<2x256xf32, #tpu.memory_space<vmem>>, vector<1x256xf32>
      %25 = vector.broadcast %23 : vector<8x1xf32> to vector<8x256xf32>
      %26 = vector.broadcast %24 : vector<1x256xf32> to vector<8x256xf32>
      %27 = arith.mulf %25, %26 : vector<8x256xf32>
      %28 = vector.extract_strided_slice %22 {offsets = [0, 1], sizes = [8, 1], strides = [1, 1]} : vector<8x2xf32> to vector<8x1xf32>
      %c1 = arith.constant 1 : index
      %c0_21 = arith.constant 0 : index
      %29 = vector.load %arg6[%c1, %c0_21] : memref<2x256xf32, #tpu.memory_space<vmem>>, vector<1x256xf32>
      %30 = vector.broadcast %28 : vector<8x1xf32> to vector<8x256xf32>
      %31 = vector.broadcast %29 : vector<1x256xf32> to vector<8x256xf32>
      %32 = arith.mulf %30, %31 : vector<8x256xf32>
      %33 = arith.addf %27, %32 : vector<8x256xf32>
      %c0_22 = arith.constant 0 : index
      %c0_23 = arith.constant 0 : index
      %34 = vector.load %arg7[%c0_22, %c0_23] : memref<1x256xf32, #tpu.memory_space<vmem>>, vector<1x256xf32>
      %35 = vector.broadcast %34 : vector<1x256xf32> to vector<8x256xf32>
      %36 = arith.addf %33, %35 : vector<8x256xf32>
      %cst_24 = arith.constant 0.000000e+00 : f32
      %37 = vector.broadcast %cst_24 : f32 to vector<8x256xf32>
      %38 = arith.maximumf %36, %37 : vector<8x256xf32>
      %39 = arith.truncf %38 : vector<8x256xf32> to vector<8x256xbf16>
      %c0_25 = arith.constant 0 : index
      %c0_26 = arith.constant 0 : index
      %40 = vector.load %arg8[%c0_25, %c0_26] : memref<256x256xbf16, #tpu.memory_space<vmem>>, vector<256x256xbf16>
      %cst_27 = arith.constant dense<0.000000e+00> : vector<8x256xf32>
      %41 = tpu.matmul %39, %40, %cst_27 {dimension_numbers = #tpu.dot_dimension_numbers<[1], [0], [0], [1], [0, 0, 1, 1], [], []>} : vector<8x256xbf16>, vector<256x256xbf16>, vector<8x256xf32> -> vector<8x256xf32>
      %42 = arith.truncf %21 : vector<8x512xf32> to vector<8x512xbf16>
      %c0_28 = arith.constant 0 : index
      %c0_29 = arith.constant 0 : index
      %43 = vector.load %arg9[%c0_28, %c0_29] : memref<512x256xbf16, #tpu.memory_space<vmem>>, vector<512x256xbf16>
      %cst_30 = arith.constant dense<0.000000e+00> : vector<8x256xf32>
      %44 = tpu.matmul %42, %43, %cst_30 {dimension_numbers = #tpu.dot_dimension_numbers<[1], [0], [0], [1], [0, 0, 1, 1], [], []>} : vector<8x512xbf16>, vector<512x256xbf16>, vector<8x256xf32> -> vector<8x256xf32>
      %45 = arith.addf %41, %44 : vector<8x256xf32>
      %c0_31 = arith.constant 0 : index
      %c0_32 = arith.constant 0 : index
      %46 = vector.load %arg10[%c0_31, %c0_32] : memref<1x256xf32, #tpu.memory_space<vmem>>, vector<1x256xf32>
      %47 = vector.broadcast %46 : vector<1x256xf32> to vector<8x256xf32>
      %48 = arith.addf %45, %47 : vector<8x256xf32>
      %cst_33 = arith.constant 0.000000e+00 : f32
      %49 = vector.broadcast %cst_33 : f32 to vector<8x256xf32>
      %50 = arith.maximumf %48, %49 : vector<8x256xf32>
      %51 = arith.truncf %50 : vector<8x256xf32> to vector<8x256xbf16>
      %c0_34 = arith.constant 0 : index
      %c0_35 = arith.constant 0 : index
      %52 = vector.load %arg11[%c0_34, %c0_35] : memref<256x128xbf16, #tpu.memory_space<vmem>>, vector<256x128xbf16>
      %cst_36 = arith.constant dense<0.000000e+00> : vector<8x128xf32>
      %53 = tpu.matmul %51, %52, %cst_36 {dimension_numbers = #tpu.dot_dimension_numbers<[1], [0], [0], [1], [0, 0, 1, 1], [], []>} : vector<8x256xbf16>, vector<256x128xbf16>, vector<8x128xf32> -> vector<8x128xf32>
      %c0_37 = arith.constant 0 : index
      %c0_38 = arith.constant 0 : index
      %54 = vector.load %arg12[%c0_37, %c0_38] : memref<1x128xf32, #tpu.memory_space<vmem>>, vector<1x128xf32>
      %55 = vector.broadcast %54 : vector<1x128xf32> to vector<8x128xf32>
      %56 = arith.addf %53, %55 : vector<8x128xf32>
      %57 = arith.negf %56 : vector<8x128xf32>
      %58 = math.exp %57 : vector<8x128xf32>
      %cst_39 = arith.constant 1.000000e+00 : f32
      %59 = vector.broadcast %cst_39 : f32 to vector<8x128xf32>
      %60 = arith.addf %59, %58 : vector<8x128xf32>
      %61 = arith.divf %59, %60 : vector<8x128xf32>
      %cst_40 = arith.constant 2.000000e+00 : f32
      %62 = vector.broadcast %cst_40 : f32 to vector<8x128xf32>
      %63 = arith.mulf %61, %62 : vector<8x128xf32>
      %c0_41 = arith.constant 0 : index
      %c0_42 = arith.constant 0 : index
      %64 = vector.load %arg13[%c0_41, %c0_42] : memref<8x128xf32, #tpu.memory_space<vmem>>, vector<8x128xf32>
      tpu.vector_store %arg13[%c0_41, %c0_42], %63 {strides = array<i32>} : memref<8x128xf32, #tpu.memory_space<vmem>>, vector<8x128xf32>,
    } else {
    }
    return
  }
  func.func @transform_0(%arg0: i32, %arg1: i32) -> (i32, i32, i32) {
    %c0_i32 = arith.constant 0 : i32
    %c0_i32_0 = arith.constant 0 : i32
    return %arg0, %arg1, %c0_i32 : i32, i32, i32
  }
  func.func @transform_1(%arg0: i32, %arg1: i32) -> (i32, i32) {
    %c0_i32 = arith.constant 0 : i32
    %c0_i32_0 = arith.constant 0 : i32
    return %arg0, %c0_i32 : i32, i32
  }
  func.func @transform_2(%arg0: i32, %arg1: i32) -> (i32, i32) {
    %c0_i32 = arith.constant 0 : i32
    %c0_i32_0 = arith.constant 0 : i32
    %c0_i32_1 = arith.constant 0 : i32
    return %c0_i32, %c0_i32_0 : i32, i32
  }
  func.func @transform_3(%arg0: i32, %arg1: i32) -> (i32, i32) {
    %c0_i32 = arith.constant 0 : i32
    %c0_i32_0 = arith.constant 0 : i32
    %c0_i32_1 = arith.constant 0 : i32
    return %c0_i32, %c0_i32_0 : i32, i32
  }
  func.func @transform_4(%arg0: i32, %arg1: i32) -> (i32, i32) {
    %c0_i32 = arith.constant 0 : i32
    %c0_i32_0 = arith.constant 0 : i32
    %c0_i32_1 = arith.constant 0 : i32
    return %c0_i32, %c0_i32_0 : i32, i32
  }
  func.func @transform_5(%arg0: i32, %arg1: i32) -> (i32, i32) {
    %c0_i32 = arith.constant 0 : i32
    %c0_i32_0 = arith.constant 0 : i32
    %c0_i32_1 = arith.constant 0 : i32
    return %c0_i32, %c0_i32_0 : i32, i32
  }
  func.func @transform_6(%arg0: i32, %arg1: i32) -> (i32, i32) {
    %c0_i32 = arith.constant 0 : i32
    %c0_i32_0 = arith.constant 0 : i32
    %c0_i32_1 = arith.constant 0 : i32
    return %c0_i32, %c0_i32_0 : i32, i32
  }
  func.func @transform_7(%arg0: i32, %arg1: i32) -> (i32, i32) {
    %c0_i32 = arith.constant 0 : i32
    %c0_i32_0 = arith.constant 0 : i32
    %c0_i32_1 = arith.constant 0 : i32
    return %c0_i32, %c0_i32_0 : i32, i32
  }
  func.func @transform_8(%arg0: i32, %arg1: i32) -> (i32, i32) {
    %c0_i32 = arith.constant 0 : i32
    %c0_i32_0 = arith.constant 0 : i32
    %c0_i32_1 = arith.constant 0 : i32
    return %c0_i32, %c0_i32_0 : i32, i32
  }
  func.func @transform_9(%arg0: i32, %arg1: i32) -> (i32, i32) {
    %c0_i32 = arith.constant 0 : i32
    %c0_i32_0 = arith.constant 0 : i32
    %c0_i32_1 = arith.constant 0 : i32
    return %c0_i32, %c0_i32_0 : i32, i32
  }
  func.func @transform_10(%arg0: i32, %arg1: i32) -> (i32, i32) {
    %c0_i32 = arith.constant 0 : i32
    %c0_i32_0 = arith.constant 0 : i32
    %c0_i32_1 = arith.constant 0 : i32
    return %c0_i32, %c0_i32_0 : i32, i32
  }
  func.func @transform_11(%arg0: i32, %arg1: i32) -> (i32, i32) {
    %c0_i32 = arith.constant 0 : i32
    %c0_i32_0 = arith.constant 0 : i32
    return %arg0, %c0_i32 : i32, i32
  }
}

</mosaic_0001>

<bundles_post_ra>
// kernel: tpu_custom_call.1
= control target key start
LH: loop header
LB: loop body
LE: loop exit
PB: predicated region body
PF: predicated region fallthrough
CT: control target
= control target key end

     0   :  { %16 = vsyncpa [#allocation4], 0  ;;  %s2685_s0 = inlined_call_operand.vmem [shape: f32[8,16,12], index: 0, kind: input, shape index: {}]   ;;  %s2686_s1 = inlined_call_operand.vmem [shape: f32[8,2], index: 1, kind: input, shape index: {}]   ;;  %s2687_s2 = inlined_call_operand.hbm [shape: bf16[12,512], index: 2, kind: input, shape index: {}]   ;;  %s2688_s3 = inlined_call_operand.hbm [shape: f32[1,512], index: 3, kind: input, shape index: {}]   ;;  %s2689_s4 = inlined_call_operand.hbm [shape: f32[2,256], index: 4, kind: input, shape index: {}]   ;;  %s2690_s5 = inlined_call_operand.hbm [shape: f32[1,256], index: 5, kind: input, shape index: {}]   ;;  %s2691_s6 = inlined_call_operand.vmem [shape: bf16[256,256], index: 6, kind: input, shape index: {}]   ;;  %s2692_s7 = inlined_call_operand.hbm [shape: bf16[512,256], index: 7, kind: input, shape index: {}]   ;;  %s2693_s8 = inlined_call_operand.vmem [shape: f32[1,256], index: 8, kind: input, shape index: {}]   ;;  %s2694_s9 = inlined_call_operand.hbm [shape: bf16[256,128], index: 9, kind: input, shape index: {}]   ;;  %s2695_s10 = inlined_call_operand.vmem [shape: f32[1,128], index: 10, kind: input, shape index: {}]   ;;  %s2696_s11 = inlined_call_operand.hbm [shape: f32[8,128], index: 11, kind: output, shape index: {}]  }
   0x1   :  { %17 = vsyncpa [#allocation7], 0 }
   0x2   :  { %18 = vsyncpa [#allocation10], 0 }
   0x3   :  { %19 = vsyncpa [#allocation13], 0 }
   0x4   :  { %20 = vsyncpa [#allocation5], 0  ;;  %s2266_s17 = smov [#allocation6]   ;;  %s2267_s19 = smov [#allocation9]  }
   0x5   :  { %s43_s18 = sshll.u32 %s2266_s17, 4  ;;  %s63_s20 = sshll.u32 %s2267_s19, 4  ;;  %s44_s18 = int_to_ptr.vmem [resolvable:$true] %s43_s18  ;;  %s64_s20 = int_to_ptr.vmem [resolvable:$true] %s63_s20 }
   0x6   :  { %s2102_s23 = scalar_lea.hbm %s2688_s3, 64 }
   0x7   :  { %p2103_p0 = scmp.ne.s32.totalorder %s2688_s3, %s2102_s23  ;;  %p2106_p1 = scmp.lt.u32.totalorder %s2102_s23, %s2688_s3 }
   0x9   :  { %p2108_p2 = pnand %p2106_p1, %p2103_p0 }
   0xb   :  { %2111 = shalt.err (!%p2108_p2)
}
   0xc   :  { %s2112_s28 = scalar_lea.vmem %s44_s18, 64  ;;  %p2117_p4 = scmp.lt.s32.totalorder %s44_s18, %s44_s18 }
   0xd   :  { %p2113_p3 = scmp.ne.s32.totalorder %s44_s18, %s2112_s28  ;;  %p2118_p5 = scmp.lt.s32.totalorder %s2112_s28, %s2112_s28 }
   0xf   :  { %p2119_p6 = por %p2118_p5, %p2117_p4 }
  0x11   :  { %p2120_p7 = pnand %p2119_p6, %p2113_p3 }
  0x13   :  { %2123 = shalt.err (!%p2120_p7)
}
  0x14   :  { %46 = dma.hbm_to_vmem [thread:$0]  %s2688_s3, 64, %s44_s18, [#allocation7]  }
  0x15   :  { %s2124_s14 = scalar_lea.hbm %s2690_s5, 32 }
  0x16   :  { %p2125_p8 = scmp.ne.s32.totalorder %s2690_s5, %s2124_s14  ;;  %p2128_p9 = scmp.lt.u32.totalorder %s2124_s14, %s2690_s5 }
  0x18   :  { %p2130_p10 = pnand %p2128_p9, %p2125_p8 }
  0x1a   :  { %2133 = shalt.err (!%p2130_p10)
}
  0x1b   :  { %s2134_s21 = scalar_lea.vmem %s64_s20, 32  ;;  %p2139_p12 = scmp.lt.s32.totalorder %s64_s20, %s64_s20 }
  0x1c   :  { %p2135_p11 = scmp.ne.s32.totalorder %s64_s20, %s2134_s21  ;;  %p2140_p13 = scmp.lt.s32.totalorder %s2134_s21, %s2134_s21 }
  0x1e   :  { %p2141_p0 = por %p2140_p13, %p2139_p12 }
  0x20   :  { %p2142_p1 = pnand %p2141_p0, %p2135_p11 }
  0x22   :  { %2145 = shalt.err (!%p2142_p1)
}
  0x23   :  { %66 = dma.hbm_to_vmem [thread:$0]  %s2690_s5, 32, %s64_s20, [#allocation10]  }
  0x24   :  { %s2268_s22 = smov [#allocation3]   ;;  %s2146_s26 = scalar_lea.hbm %s2687_s2, 512 }
  0x25   :  { %s30_s23 = sshll.u32 %s2268_s22, 4  ;;  %p2147_p2 = scmp.ne.s32.totalorder %s2687_s2, %s2146_s26  ;;  %s31_s23 = int_to_ptr.vmem [resolvable:$true] %s30_s23 }
  0x26   :  { %p2150_p3 = scmp.lt.u32.totalorder %s2146_s26, %s2687_s2 }
  0x28   :  { %p2152_p4 = pnand %p2150_p3, %p2147_p2 }
  0x2a   :  { %2155 = shalt.err (!%p2152_p4)
}
  0x2b   :  { %s2156_s12 = scalar_lea.vmem %s31_s23, 512  ;;  %p2161_p6 = scmp.lt.s32.totalorder %s31_s23, %s31_s23 }
  0x2c   :  { %p2157_p5 = scmp.ne.s32.totalorder %s31_s23, %s2156_s12  ;;  %p2162_p7 = scmp.lt.s32.totalorder %s2156_s12, %s2156_s12 }
  0x2e   :  { %p2163_p8 = por %p2162_p7, %p2161_p6 }
  0x30   :  { %p2164_p9 = pnand %p2163_p8, %p2157_p5 }
  0x32   :  { %2167 = shalt.err (!%p2164_p9)
}
  0x33   :  { %s2269_s5 = smov 256   ;;  %s2270_s20 = smov 16  }
  0x34   :  { %36 = dma.hbm_to_vmem [thread:$0]  %s2687_s2, 512, %s31_s23, [#allocation4], %s2269_s5, %s2269_s5, %s2270_s20  }
  0x35   :  { %s2271_s15 = smov [#allocation8]   ;;  %s2272_s17 = smov [#allocation11]  }
  0x36   :  { %s53_s16 = sshll.u32 %s2271_s15, 4  ;;  %s74_s19 = sshll.u32 %s2272_s17, 4  ;;  %s54_s16 = int_to_ptr.vmem [resolvable:$true] %s53_s16  ;;  %s75_s19 = int_to_ptr.vmem [resolvable:$true] %s74_s19 }
  0x37   :  { %s2168_s18 = scalar_lea.hbm %s2689_s4, 64 }
  0x38   :  { %p2169_p10 = scmp.ne.s32.totalorder %s2689_s4, %s2168_s18  ;;  %p2172_p11 = scmp.lt.u32.totalorder %s2168_s18, %s2689_s4 }
  0x3a   :  { %p2174_p12 = pnand %p2172_p11, %p2169_p10 }
  0x3c   :  { %2177 = shalt.err (!%p2174_p12)
}
  0x3d   :  { %s2178_s2 = scalar_lea.vmem %s54_s16, 64  ;;  %p2183_p0 = scmp.lt.s32.totalorder %s54_s16, %s54_s16 }
  0x3e   :  { %p2179_p13 = scmp.ne.s32.totalorder %s54_s16, %s2178_s2  ;;  %p2184_p1 = scmp.lt.s32.totalorder %s2178_s2, %s2178_s2 }
  0x40   :  { %p2185_p2 = por %p2184_p1, %p2183_p0 }
  0x42   :  { %p2186_p3 = pnand %p2185_p2, %p2179_p13 }
  0x44   :  { %2189 = shalt.err (!%p2186_p3)
}
  0x45   :  { %56 = dma.hbm_to_vmem [thread:$0]  %s2689_s4, 64, %s54_s16, [#allocation7]  }
  0x46   :  { %s2190_s30 = scalar_lea.hbm %s2692_s7, 8192 }
  0x47   :  { %p2191_p4 = scmp.ne.s32.totalorder %s2692_s7, %s2190_s30  ;;  %p2194_p5 = scmp.lt.u32.totalorder %s2190_s30, %s2692_s7 }
  0x49   :  { %p2196_p6 = pnand %p2194_p5, %p2191_p4 }
  0x4b   :  { %2199 = shalt.err (!%p2196_p6)
}
  0x4c   :  { %s2200_s14 = scalar_lea.vmem %s75_s19, 8192  ;;  %p2205_p8 = scmp.lt.s32.totalorder %s75_s19, %s75_s19 }
  0x4d   :  { %p2201_p7 = scmp.ne.s32.totalorder %s75_s19, %s2200_s14  ;;  %p2206_p9 = scmp.lt.s32.totalorder %s2200_s14, %s2200_s14 }
  0x4f   :  { %p2207_p10 = por %p2206_p9, %p2205_p8 }
  0x51   :  { %p2208_p11 = pnand %p2207_p10, %p2201_p7 }
  0x53   :  { %2211 = shalt.err (!%p2208_p11)
}
  0x54   :  { %s2273_s4 = smov 128   ;;  %s2274_s15 = smov 8  }
  0x55   :  { %80 = dma.hbm_to_vmem [thread:$0]  %s2692_s7, 8192, %s75_s19, [#allocation10], %s2273_s4, %s2273_s4, %s2274_s15  }
  0x56   :  { %s2275_s21 = smov [#allocation12]   ;;  %s2212_s24 = scalar_lea.hbm %s2694_s9, 2048 }
  0x57   :  { %s88_s3 = sshll.u32 %s2275_s21, 4  ;;  %p2213_p12 = scmp.ne.s32.totalorder %s2694_s9, %s2212_s24  ;;  %s89_s3 = int_to_ptr.vmem [resolvable:$true] %s88_s3 }
  0x58   :  { %p2216_p13 = scmp.lt.u32.totalorder %s2212_s24, %s2694_s9 }
  0x5a   :  { %p2218_p0 = pnand %p2216_p13, %p2213_p12 }
  0x5c   :  { %2221 = shalt.err (!%p2218_p0)
}
  0x5d   :  { %s2222_s27 = scalar_lea.vmem %s89_s3, 2048  ;;  %p2227_p2 = scmp.lt.s32.totalorder %s89_s3, %s89_s3 }
  0x5e   :  { %p2223_p1 = scmp.ne.s32.totalorder %s89_s3, %s2222_s27  ;;  %p2228_p3 = scmp.lt.s32.totalorder %s2222_s27, %s2222_s27 }
  0x60   :  { %p2229_p4 = por %p2228_p3, %p2227_p2 }
  0x62   :  { %p2230_p5 = pnand %p2229_p4, %p2223_p1 }
  0x64   :  { %2233 = shalt.err (!%p2230_p5)
}
  0x65   :  { %s2276_s7 = smov 64   ;;  %s2277_s19 = smov 4  }
  0x66   :  { %94 = dma.hbm_to_vmem [thread:$0]  %s2694_s9, 2048, %s89_s3, [#allocation13], %s2276_s7, %s2276_s7, %s2277_s19  }
  0x67   :  { %2256 = dma.done.wait [#allocation4], 512  }
  0x68   :  { %2257 = vsyncadd [#allocation4], 4294966784 }
  0x69   :  { %2258 = dma.done.wait [#allocation7], 128  }
  0x6a   :  { %2259 = vsyncadd [#allocation7], 4294967168 }
  0x6b   :  { %2260 = dma.done.wait [#allocation10], 8224  }
  0x6c   :  { %2261 = vsyncadd [#allocation10], 4294959072 }
  0x6d   :  { %2262 = dma.done.wait [#allocation13], 2048  }
  0x6e   :  { %2263 = vsyncadd [#allocation13], 4294965248  ;;  %v2278_v0 = vmov 0   ;;  %vm185_vm0 = vcmask 1045504   ;;  %v116_v5 = vld [vmem:[%s2685_s0] sm:$0xff]  ;;  %v117_v6 = vld [vmem:[%s2685_s0 + $0x8] sm:$0xff] }
  0x6f   :  { %230 = vmatprep.mubr.bf16.mxu0 %v2278_v0  ;;  %343 = vmatprep.mubr.bf16.mxu1 %v2278_v0  ;;  %v1932_v1 = vld [vmem:[#allocation3 + $0x4] ss:$16 sps:$4 sm:$0x3f]   ;;  %v1934_v2 = vld [vmem:[#allocation3 + $0xc] ss:$16 sps:$4 sm:$0x3f]   ;;  %v132_v9 = vpack.c.bf16 %v117_v6, %v116_v5 }
  0x70   :  { %1930 = vset.pattern.permute.xlu0 %v2278_v0  ;;  %1761 = vmatprep.subr.msk.bf16.mxu0 %vm185_vm0, %v1932_v1  ;;  %v1936_v3 = vld [vmem:[#allocation3] ss:$16 sps:$4 sm:$0x3f]   ;;  %v1937_v4 = vld [vmem:[#allocation3 + $0x8] ss:$16 sps:$4 sm:$0x3f]  }
  0x71   :  { %1770 = vmatprep.subr.msk.bf16.mxu1 %vm185_vm0, %v1934_v2  ;;  %v187_v7 = vsel %vm185_vm0, %v1936_v3, 0  ;;  %v193_v8 = vsel %vm185_vm0, %v1937_v4, 0  ;;  %vm160_vm1 = vcmask 97280   ;;  %v118_v10 = vld [vmem:[%s2685_s0 + $0x10] sm:$0xff]  ;;  %v119_v11 = vld [vmem:[%s2685_s0 + $0x18] sm:$0xff]  ;;  %v776_v12 = vld [vmem:[%s2686_s1] sm:$0xff] }
  0x72   :  { %199 = vmatpush1.bf16.msra.mxu0 %v187_v7  ;;  %312 = vmatpush1.bf16.msra.mxu1 %v193_v8  ;;  %v133_v13 = vpack.c.bf16 %v119_v11, %v118_v10  ;;  %v120_v14 = vld [vmem:[%s2685_s0 + $0x20] sm:$0xff]  ;;  %v121_v15 = vld [vmem:[%s2685_s0 + $0x28] sm:$0xff]  ;;  %v122_v17 = vld [vmem:[%s2685_s0 + $0x30] sm:$0xff]  ;;  %v2279_v32 = vmov 1   ;;  %vm692_vm2 = vcmask 1041409   ;;  %vm694_vm3 = vcmask 1042434  }
  0x73   :  { %780 = vperm.xlu0 %1930, %v776_v12   ;;  %v134_v16 = vpack.c.bf16 %v121_v15, %v120_v14  ;;  %v123_v18 = vld [vmem:[%s2685_s0 + $0x38] sm:$0xff]  ;;  %v124_v20 = vld [vmem:[%s2685_s0 + $0x40] sm:$0xff]  ;;  %v125_v21 = vld [vmem:[%s2685_s0 + $0x48] sm:$0xff]  ;;  %vm696_vm4 = vcmask 1043459   ;;  %vm698_vm5 = vcmask 1044484   ;;  %vm700_vm6 = vcmask 1045509  }
  0x74   :  { %v135_v19 = vpack.c.bf16 %v123_v18, %v122_v17  ;;  %v136_v22 = vpack.c.bf16 %v125_v21, %v124_v20  ;;  %v126_v23 = vld [vmem:[%s2685_s0 + $0x50] sm:$0xff]  ;;  %v127_v24 = vld [vmem:[%s2685_s0 + $0x58] sm:$0xff]  ;;  %v128_v26 = vld [vmem:[%s2685_s0 + $0x60] sm:$0xff]  ;;  %vm702_vm7 = vcmask 1046534   ;;  %vm704_vm8 = vcmask 1047559   ;;  %s2280_s2 = smov [#allocation14]  }
  0x75   :  { %1762 = vmatmul.mubr.msk.bf16.vlgmr.msra.gmra.mrb[0].mxu0 %vm160_vm1, %v132_v9  ;;  %1771 = vmatmul.mubr.msk.bf16.vlgmr.msra.gmra.mrb[0].mxu1 %vm160_vm1, %v132_v9  ;;  %v137_v25 = vpack.c.bf16 %v127_v24, %v126_v23  ;;  %v129_v27 = vld [vmem:[%s2685_s0 + $0x68] sm:$0xff]  ;;  %v130_v29 = vld [vmem:[%s2685_s0 + $0x70] sm:$0xff]  ;;  %v131_v30 = vld [vmem:[%s2685_s0 + $0x78] sm:$0xff]  ;;  %s1745_s23 = sshll.u32 %s2280_s2, 4  ;;  %s1746_s23 = int_to_ptr.vmem [resolvable:$true] %s1745_s23 }
  0x76   :  { %240 = vmatprep.mubr.bf16.mxu0 %v2278_v0  ;;  %353 = vmatprep.mubr.bf16.mxu1 %v2278_v0  ;;  %v138_v28 = vpack.c.bf16 %v129_v27, %v128_v26  ;;  %v139_v31 = vpack.c.bf16 %v131_v30, %v130_v29  ;;  %v1940_v33 = vld [vmem:[#allocation11 + $0x4] ss:$8 sps:$4 sm:$0xff]   ;;  %v1938_v34 = vld [vmem:[#allocation11] ss:$8 sps:$4 sm:$0xff]   ;;  %v1946_v37 = vld [vmem:[#allocation11 + $0x14] ss:$8 sps:$4 sm:$0xff]   ;;  %p2239_p7 = scmp.lt.s32.totalorder %s1746_s23, %s1746_s23 }
  0x77   :  { %1931 = vset.pattern.permute.xlu0 %v2279_v32  ;;  %v1943_v35 = vld [vmem:[#allocation11 + $0x104] ss:$8 sps:$4 sm:$0xff]   ;;  %1255 = vmatprep.subr.bf16.mxu0 %v1940_v33  ;;  %v1941_v36 = vld [vmem:[#allocation11 + $0x100] ss:$8 sps:$4 sm:$0xff]   ;;  %v1944_v38 = vld [vmem:[#allocation11 + $0x10] ss:$8 sps:$4 sm:$0xff]  }
  0x78   :  { %799 = vperm.xlu0 %1931, %v776_v12   ;;  %1256 = vmatpush1.bf16.msra.mxu0 %v1938_v34  ;;  %v1949_v39 = vld [vmem:[#allocation11 + $0x114] ss:$8 sps:$4 sm:$0xff]   ;;  %v1947_v40 = vld [vmem:[#allocation11 + $0x110] ss:$8 sps:$4 sm:$0xff]   ;;  %v1952_v41 = vld [vmem:[#allocation11 + $0x24] ss:$8 sps:$4 sm:$0xff]  }
  0x79   :  { %1296 = vmatprep.subr.bf16.mxu1 %v1943_v35  ;;  %1257 = vmatprep.subr.bf16.mxu0 %v1946_v37  ;;  %v1950_v42 = vld [vmem:[#allocation11 + $0x20] ss:$8 sps:$4 sm:$0xff]   ;;  %v1955_v43 = vld [vmem:[#allocation11 + $0x124] ss:$8 sps:$4 sm:$0xff]   ;;  %v1958_v45 = vld [vmem:[#allocation11 + $0x34] ss:$8 sps:$4 sm:$0xff]  }
  0x7a   :  { %1297 = vmatpush1.bf16.msra.mxu1 %v1941_v36  ;;  %v1953_v44 = vld [vmem:[#allocation11 + $0x120] ss:$8 sps:$4 sm:$0xff]   ;;  %v1956_v46 = vld [vmem:[#allocation11 + $0x30] ss:$8 sps:$4 sm:$0xff]   ;;  %v1961_v47 = vld [vmem:[#allocation11 + $0x134] ss:$8 sps:$4 sm:$0xff]   ;;  %v748_v36 = vlaneseq }
  0x7b   :  { %1298 = vmatprep.subr.bf16.mxu1 %v1949_v39  ;;  %v1959_v48 = vld [vmem:[#allocation11 + $0x130] ss:$8 sps:$4 sm:$0xff]   ;;  %v1964_v49 = vld [vmem:[#allocation11 + $0x44] ss:$8 sps:$4 sm:$0xff]   ;;  %v1962_v50 = vld [vmem:[#allocation11 + $0x40] ss:$8 sps:$4 sm:$0xff]  }
  0x7c   :  { %1258 = vmatpush1.bf16.msra.mxu0 %v1944_v38  ;;  %v1967_v51 = vld [vmem:[#allocation11 + $0x144] ss:$8 sps:$4 sm:$0xff]   ;;  %v1965_v52 = vld [vmem:[#allocation11 + $0x140] ss:$8 sps:$4 sm:$0xff]   ;;  %v1970_v53 = vld [vmem:[#allocation11 + $0x54] ss:$8 sps:$4 sm:$0xff]  }
  0x7d   :  { %1763 = vmatmul.mubr.msk.bf16.gmra.mrb[4].mxu0 %vm160_vm1, %v133_v13  ;;  %1772 = vmatmul.mubr.msk.bf16.gmra.mrb[4].mxu1 %vm160_vm1, %v133_v13  ;;  %v1968_v54 = vld [vmem:[#allocation11 + $0x50] ss:$8 sps:$4 sm:$0xff]   ;;  %v1973_v55 = vld [vmem:[#allocation11 + $0x154] ss:$8 sps:$4 sm:$0xff]   ;;  %v1976_v57 = vld [vmem:[#allocation11 + $0x64] ss:$8 sps:$4 sm:$0xff]  }
  0x7e   :  { %250 = vmatprep.mubr.bf16.mxu0 %v2278_v0  ;;  %363 = vmatprep.mubr.bf16.mxu1 %v2278_v0  ;;  %v1971_v56 = vld [vmem:[#allocation11 + $0x150] ss:$8 sps:$4 sm:$0xff]   ;;  %v1974_v58 = vld [vmem:[#allocation11 + $0x60] ss:$8 sps:$4 sm:$0xff]   ;;  %v1979_v59 = vld [vmem:[#allocation11 + $0x164] ss:$8 sps:$4 sm:$0xff]  }
  0x7f   :  { %1299 = vmatpush1.bf16.msra.mxu1 %v1947_v40  ;;  %1259 = vmatprep.subr.bf16.mxu0 %v1952_v41  ;;  %v1977_v60 = vld [vmem:[#allocation11 + $0x160] ss:$8 sps:$4 sm:$0xff]   ;;  %v1982_v61 = vld [vmem:[#allocation11 + $0x74] ss:$8 sps:$4 sm:$0xff]   ;;  %v1980_v62 = vld [vmem:[#allocation11 + $0x70] ss:$8 sps:$4 sm:$0xff]  }
  0x80   :  { %1260 = vmatpush1.bf16.msra.mxu0 %v1950_v42  ;;  %1300 = vmatprep.subr.bf16.mxu1 %v1955_v43  ;;  %v1985_v63 = vld [vmem:[#allocation11 + $0x174] ss:$8 sps:$4 sm:$0xff]   ;;  %v1988_v1 = vld [vmem:[#allocation11 + $0x84] ss:$8 sps:$4 sm:$0xff]   ;;  %v1986_v2 = vld [vmem:[#allocation11 + $0x80] ss:$8 sps:$4 sm:$0xff]  }
  0x81   :  { %1261 = vmatprep.subr.bf16.mxu0 %v1958_v45  ;;  %v1991_v3 = vld [vmem:[#allocation11 + $0x184] ss:$8 sps:$4 sm:$0xff]   ;;  %v1989_v4 = vld [vmem:[#allocation11 + $0x180] ss:$8 sps:$4 sm:$0xff]   ;;  %v1994_v5 = vld [vmem:[#allocation11 + $0x94] ss:$8 sps:$4 sm:$0xff]  }
  0x82   :  { %v1992_v6 = vld [vmem:[#allocation11 + $0x90] ss:$8 sps:$4 sm:$0xff]   ;;  %v1997_v7 = vld [vmem:[#allocation11 + $0x194] ss:$8 sps:$4 sm:$0xff]   ;;  %v2000_v9 = vld [vmem:[#allocation11 + $0xa4] ss:$8 sps:$4 sm:$0xff]  }
  0x83   :  { %1301 = vmatpush1.bf16.msra.mxu1 %v1953_v44  ;;  %v1995_v8 = vld [vmem:[#allocation11 + $0x190] ss:$8 sps:$4 sm:$0xff]   ;;  %v1998_v10 = vld [vmem:[#allocation11 + $0xa0] ss:$8 sps:$4 sm:$0xff]   ;;  %v2003_v11 = vld [vmem:[#allocation11 + $0x1a4] ss:$8 sps:$4 sm:$0xff]  }
  0x84   :  { %1262 = vmatpush1.bf16.msra.mxu0 %v1956_v46  ;;  %1302 = vmatprep.subr.bf16.mxu1 %v1961_v47  ;;  %v2001_v12 = vld [vmem:[#allocation11 + $0x1a0] ss:$8 sps:$4 sm:$0xff]   ;;  %v2006_v13 = vld [vmem:[#allocation11 + $0xb4] ss:$8 sps:$4 sm:$0xff]   ;;  %v2004_v14 = vld [vmem:[#allocation11 + $0xb0] ss:$8 sps:$4 sm:$0xff]  }
  0x85   :  { %1764 = vmatmul.mubr.msk.bf16.gmra.mrb[8].mxu0 %vm160_vm1, %v134_v16  ;;  %1773 = vmatmul.mubr.msk.bf16.gmra.mrb[8].mxu1 %vm160_vm1, %v134_v16  ;;  %v2009_v15 = vld [vmem:[#allocation11 + $0x1b4] ss:$8 sps:$4 sm:$0xff]   ;;  %v2007_v16 = vld [vmem:[#allocation11 + $0x1b0] ss:$8 sps:$4 sm:$0xff]   ;;  %v2012_v17 = vld [vmem:[#allocation11 + $0xc4] ss:$8 sps:$4 sm:$0xff]  }
  0x86   :  { %260 = vmatprep.mubr.bf16.mxu0 %v2278_v0  ;;  %373 = vmatprep.mubr.bf16.mxu1 %v2278_v0  ;;  %v2010_v18 = vld [vmem:[#allocation11 + $0xc0] ss:$8 sps:$4 sm:$0xff]   ;;  %v2018_v21 = vld [vmem:[#allocation11 + $0xd4] ss:$8 sps:$4 sm:$0xff]   ;;  %v2019_v24 = vld [vmem:[#allocation11 + $0x1d0] ss:$8 sps:$4 sm:$0xff]  }
  0x87   :  { %1303 = vmatpush1.bf16.msra.mxu1 %v1959_v48  ;;  %1263 = vmatprep.subr.bf16.mxu0 %v1964_v49  ;;  %v2013_v20 = vld [vmem:[#allocation11 + $0x1c0] ss:$8 sps:$4 sm:$0xff]   ;;  %v2021_v23 = vld [vmem:[#allocation11 + $0x1d4] ss:$8 sps:$4 sm:$0xff]   ;;  %v2028_v30 = vld [vmem:[#allocation11 + $0xf0] ss:$8 sps:$4 sm:$0xff]  }
  0x88   :  { %1264 = vmatpush1.bf16.msra.mxu0 %v1962_v50  ;;  %1304 = vmatprep.subr.bf16.mxu1 %v1967_v51  ;;  %v2022_v26 = vld [vmem:[#allocation11 + $0xe0] ss:$8 sps:$4 sm:$0xff]   ;;  %v2030_v29 = vld [vmem:[#allocation11 + $0xf4] ss:$8 sps:$4 sm:$0xff]   ;;  %v2031_v32 = vld [vmem:[#allocation11 + $0x1f0] ss:$8 sps:$4 sm:$0xff]  }
  0x89   :  { %1265 = vmatprep.subr.bf16.mxu0 %v1970_v53  ;;  %v2025_v27 = vld [vmem:[#allocation11 + $0x1e0] ss:$8 sps:$4 sm:$0xff]   ;;  %v2500_v47 = vshrl.u32 %v748_v36, 7  ;;  %s2234_s27 = scalar_lea.vmem %s1746_s23, 128 }
  0x8a   :  { %v2036_v33 = vld [vmem:[%s2691_s6 + $0x4] ss:$8 sps:$4 sm:$0xff]   ;;  %p2235_p6 = scmp.ne.s32.totalorder %s1746_s23, %s2234_s27  ;;  %p2240_p8 = scmp.lt.s32.totalorder %s2234_s27, %s2234_s27 }
  0x8b   :  { %1305 = vmatpush1.bf16.msra.mxu1 %v1965_v52 }
  0x8c   :  { %1266 = vmatpush1.bf16.msra.mxu0 %v1968_v54  ;;  %1306 = vmatprep.subr.bf16.mxu1 %v1973_v55  ;;  %v2502_v54 = vld [vmem:[#allocation8] ss:$2 sm:$0x3]  ;;  %p2241_p9 = por %p2240_p8, %p2239_p7 }
  0x8d   :  { %1765 = vmatmul.mubr.msk.bf16.gmra.mrb[12].mxu0 %vm160_vm1, %v135_v19  ;;  %1774 = vmatmul.mubr.msk.bf16.gmra.mrb[12].mxu1 %vm160_vm1, %v135_v19  ;;  %v2015_v19 = vld [vmem:[#allocation11 + $0x1c4] ss:$8 sps:$4 sm:$0xff]  }
  0x8e   :  { %270 = vmatprep.mubr.bf16.mxu0 %v2278_v0  ;;  %383 = vmatprep.mubr.bf16.mxu1 %v2278_v0  ;;  %p2242_p10 = pnand %p2241_p9, %p2235_p6 }
  0x8f   :  { %1307 = vmatpush1.bf16.msra.mxu1 %v1971_v56  ;;  %1267 = vmatprep.subr.bf16.mxu0 %v1976_v57  ;;  %v2506_v56 = vld [vmem:[#allocation8 + $0x1] ss:$2 sm:$0x3] }
  0x90   :  { %1268 = vmatpush1.bf16.msra.mxu0 %v1974_v58  ;;  %1308 = vmatprep.subr.bf16.mxu1 %v1979_v59 }
  0x91   :  { %1269 = vmatprep.subr.bf16.mxu0 %v1982_v61  ;;  %v2509_v61 = vsub.s32 1, %v2500_v47 }
  0x93   :  { %1309 = vmatpush1.bf16.msra.mxu1 %v1977_v60 }
  0x94   :  { %1270 = vmatpush1.bf16.msra.mxu0 %v1980_v62  ;;  %1310 = vmatprep.subr.bf16.mxu1 %v1985_v63 }
  0x95   :  { %1766 = vmatmul.mubr.msk.bf16.gmra.mrb[16].mxu0 %vm160_vm1, %v136_v22  ;;  %1775 = vmatmul.mubr.msk.bf16.gmra.mrb[16].mxu1 %vm160_vm1, %v136_v22  ;;  %v2016_v22 = vld [vmem:[#allocation11 + $0xd0] ss:$8 sps:$4 sm:$0xff]  }
  0x96   :  { %280 = vmatprep.mubr.bf16.mxu0 %v2278_v0  ;;  %393 = vmatprep.mubr.bf16.mxu1 %v2278_v0 }
  0x97   :  { %1271 = vmatprep.subr.bf16.mxu0 %v1988_v1 }
  0x98   :  { %1272 = vmatpush1.bf16.msra.mxu0 %v1986_v2 }
  0x99   :  { %1273 = vmatprep.subr.bf16.mxu0 %v1994_v5 }
  0x9c   :  { %1274 = vmatpush1.bf16.msra.mxu0 %v1992_v6  ;;  %v791_v6 = vrot.slane %v2502_v54, %v2509_v61 }
  0x9d   :  { %1767 = vmatmul.mubr.msk.bf16.gmra.mrb[20].mxu0 %vm160_vm1, %v137_v25  ;;  %1776 = vmatmul.mubr.msk.bf16.gmra.mrb[20].mxu1 %vm160_vm1, %v137_v25  ;;  %v2024_v25 = vld [vmem:[#allocation11 + $0xe4] ss:$8 sps:$4 sm:$0xff]  }
  0x9e   :  { %290 = vmatprep.mubr.bf16.mxu0 %v2278_v0  ;;  %403 = vmatprep.mubr.bf16.mxu1 %v2278_v0 }
  0x9f   :  { %1275 = vmatprep.subr.bf16.mxu0 %v2000_v9 }
  0xa0   :  { %1276 = vmatpush1.bf16.msra.mxu0 %v1998_v10 }
  0xa1   :  { %1277 = vmatprep.subr.bf16.mxu0 %v2006_v13 }
  0xa4   :  { %1278 = vmatpush1.bf16.msra.mxu0 %v2004_v14 }
  0xa5   :  { %1768 = vmatmul.mubr.msk.bf16.gmra.mrb[24].mxu0 %vm160_vm1, %v138_v28  ;;  %1777 = vmatmul.mubr.msk.bf16.gmra.mrb[24].mxu1 %vm160_vm1, %v138_v28  ;;  %v2027_v28 = vld [vmem:[#allocation11 + $0x1e4] ss:$8 sps:$4 sm:$0xff]  }
  0xa6   :  { %300 = vmatprep.mubr.bf16.mxu0 %v2278_v0  ;;  %413 = vmatprep.mubr.bf16.mxu1 %v2278_v0  ;;  %v1983_v0 = vld [vmem:[#allocation11 + $0x170] ss:$8 sps:$4 sm:$0xff]  }
  0xa7   :  { %1311 = vmatpush1.bf16.msra.mxu1 %v1983_v0  ;;  %1279 = vmatprep.subr.bf16.mxu0 %v2012_v17 }
  0xa8   :  { %1312 = vmatprep.subr.bf16.mxu1 %v1991_v3  ;;  %1280 = vmatpush1.bf16.msra.mxu0 %v2010_v18 }
  0xa9   :  { %1281 = vmatprep.subr.bf16.mxu0 %v2018_v21 }
  0xab   :  { %1313 = vmatpush1.bf16.msra.mxu1 %v1989_v4 }
  0xac   :  { %1314 = vmatprep.subr.bf16.mxu1 %v1997_v7  ;;  %1282 = vmatpush1.bf16.msra.mxu0 %v2016_v22  ;;  %v810_v7 = vrot.slane %v2506_v56, %v2509_v61 }
  0xad   :  { %1769 = vmatmul.mubr.msk.bf16.gmra.mrb[28].mxu0 %vm160_vm1, %v139_v31  ;;  %1778 = vmatmul.mubr.msk.bf16.gmra.mrb[28].mxu1 %vm160_vm1, %v139_v31  ;;  %v2033_v31 = vld [vmem:[#allocation11 + $0x1f4] ss:$8 sps:$4 sm:$0xff]  }
  0xae   :  { %1283 = vmatprep.subr.bf16.mxu0 %v2024_v25 }
  0xaf   :  { %1315 = vmatpush1.bf16.msra.mxu1 %v1995_v8 }
  0xb0   :  { %1316 = vmatprep.subr.bf16.mxu1 %v2003_v11  ;;  %1284 = vmatpush1.bf16.msra.mxu0 %v2022_v26 }
  0xb1   :  { %1285 = vmatprep.subr.bf16.mxu0 %v2030_v29 }
  0xb3   :  { %1317 = vmatpush1.bf16.msra.mxu1 %v2001_v12 }
  0xb4   :  { %1318 = vmatprep.subr.bf16.mxu1 %v2009_v15  ;;  %1286 = vmatpush1.bf16.msra.mxu0 %v2028_v30 }
  0xb5   :  { %1497 = vmatprep.subr.bf16.mxu0 %v2036_v33 }
  0xb7   :  { %1319 = vmatpush1.bf16.msra.mxu1 %v2007_v16 }
  0xb8   :  { %1320 = vmatprep.subr.bf16.mxu1 %v2015_v19 }
  0xbb   :  { %1321 = vmatpush1.bf16.msra.mxu1 %v2013_v20 }
  0xbc   :  { %1322 = vmatprep.subr.bf16.mxu1 %v2021_v23 }
  0xbf   :  { %1323 = vmatpush1.bf16.msra.mxu1 %v2019_v24 }
  0xc0   :  { %1324 = vmatprep.subr.bf16.mxu1 %v2027_v28 }
  0xc3   :  { %1325 = vmatpush1.bf16.msra.mxu1 %v2025_v27 }
  0xc4   :  { %1326 = vmatprep.subr.bf16.mxu1 %v2033_v31 }
  0xc7   :  { %1327 = vmatpush1.bf16.msra.mxu1 %v2031_v32 }
  0xf2   :  { %v2504_v55 = vpop.permute.xlu0 %780 }
  0xf3   :  { %v2518_v33 = vmul.f32 %v791_v6, %v2504_v55 }
  0xf7   :  { %v2515_v22 = vpop.permute.xlu0 %799 }
 0x148   :  { %v232_v34 = vpop.f32.mrb[0].mxu0  ;;  %v345_v35 = vpop.f32.mrb[0].mxu1 }
 0x149   :  { %v234_v37 = vpop.f32.mrb[1].mxu0  ;;  %v347_v38 = vpop.f32.mrb[1].mxu1 }
 0x14a   :  { %v236_v39 = vpop.f32.mrb[2].mxu0  ;;  %v349_v40 = vpop.f32.mrb[2].mxu1 }
 0x14b   :  { %v424_v41 = vmax.f32 %v232_v34, %v236_v39  ;;  %v238_v42 = vpop.f32.mrb[3].mxu0  ;;  %v438_v43 = vmax.f32 %v345_v35, %v349_v40  ;;  %v351_v44 = vpop.f32.mrb[3].mxu1  ;;  %v2521_v34 = vmul.f32 %v810_v7, %v2515_v22 }
 0x14c   :  { %v431_v45 = vmax.f32 %v234_v37, %v238_v42  ;;  %v445_v46 = vmax.f32 %v347_v38, %v351_v44 }
 0x14d   :  { %v425_v48 = vrot.slane %v424_v41, 4  ;;  %v439_v49 = vrot.slane %v438_v43, 4 }
 0x14e   :  { %v432_v50 = vrot.slane %v431_v45, 4  ;;  %v446_v51 = vrot.slane %v445_v46, 4 }
 0x14f   :  { %v426_v52 = vmax.f32 %v424_v41, %v425_v48  ;;  %v440_v53 = vmax.f32 %v438_v43, %v439_v49 }
 0x150   :  { %v433_v57 = vmax.f32 %v431_v45, %v432_v50  ;;  %v242_v58 = vpop.f32.mrb[4].mxu0  ;;  %v447_v59 = vmax.f32 %v445_v46, %v446_v51  ;;  %v355_v60 = vpop.f32.mrb[4].mxu1 }
 0x151   :  { %v427_v62 = vrot.slane %v426_v52, 2  ;;  %v244_v63 = vpop.f32.mrb[5].mxu0  ;;  %v441_v0 = vrot.slane %v440_v53, 2  ;;  %v357_v1 = vpop.f32.mrb[5].mxu1 }
 0x152   :  { %v434_v2 = vrot.slane %v433_v57, 2  ;;  %v246_v3 = vpop.f32.mrb[6].mxu0  ;;  %v448_v4 = vrot.slane %v447_v59, 2  ;;  %v359_v5 = vpop.f32.mrb[6].mxu1 }
 0x153   :  { %v428_v8 = vmax.f32 %v426_v52, %v427_v62  ;;  %v452_v9 = vmax.f32 %v242_v58, %v246_v3  ;;  %v248_v10 = vpop.f32.mrb[7].mxu0  ;;  %v442_v11 = vmax.f32 %v440_v53, %v441_v0  ;;  %v466_v12 = vmax.f32 %v355_v60, %v359_v5  ;;  %v361_v13 = vpop.f32.mrb[7].mxu1 }
 0x154   :  { %v435_v14 = vmax.f32 %v433_v57, %v434_v2  ;;  %v459_v15 = vmax.f32 %v244_v63, %v248_v10  ;;  %v449_v16 = vmax.f32 %v447_v59, %v448_v4  ;;  %v473_v17 = vmax.f32 %v357_v1, %v361_v13 }
 0x155   :  { %v429_v18 = vrot.slane %v428_v8, 1  ;;  %v453_v19 = vrot.slane %v452_v9, 4  ;;  %v443_v20 = vrot.slane %v442_v11, 1  ;;  %v467_v21 = vrot.slane %v466_v12, 4 }
 0x156   :  { %v436_v23 = vrot.slane %v435_v14, 1  ;;  %v460_v24 = vrot.slane %v459_v15, 4  ;;  %v450_v25 = vrot.slane %v449_v16, 1  ;;  %v474_v26 = vrot.slane %v473_v17, 4 }
 0x157   :  { %v454_v27 = vmax.f32 %v452_v9, %v453_v19  ;;  %v468_v28 = vmax.f32 %v466_v12, %v467_v21  ;;  %v430_v35 = vmax.f32 %v428_v8, %v429_v18  ;;  %v444_v38 = vmax.f32 %v442_v11, %v443_v20 }
 0x158   :  { %v461_v29 = vmax.f32 %v459_v15, %v460_v24  ;;  %v252_v30 = vpop.f32.mrb[8].mxu0  ;;  %v475_v31 = vmax.f32 %v473_v17, %v474_v26  ;;  %v365_v32 = vpop.f32.mrb[8].mxu1  ;;  %v437_v41 = vmax.f32 %v435_v14, %v436_v23  ;;  %v451_v44 = vmax.f32 %v449_v16, %v450_v25 }
 0x159   :  { %v455_v36 = vrot.slane %v454_v27, 2  ;;  %v254_v37 = vpop.f32.mrb[9].mxu0  ;;  %v469_v39 = vrot.slane %v468_v28, 2  ;;  %v367_v40 = vpop.f32.mrb[9].mxu1 }
 0x15a   :  { %v462_v42 = vrot.slane %v461_v29, 2  ;;  %v256_v43 = vpop.f32.mrb[10].mxu0  ;;  %v476_v45 = vrot.slane %v475_v31, 2  ;;  %v369_v46 = vpop.f32.mrb[10].mxu1 }
 0x15b   :  { %v456_v48 = vmax.f32 %v454_v27, %v455_v36  ;;  %v480_v49 = vmax.f32 %v252_v30, %v256_v43  ;;  %v258_v50 = vpop.f32.mrb[11].mxu0  ;;  %v470_v51 = vmax.f32 %v468_v28, %v469_v39  ;;  %v494_v52 = vmax.f32 %v365_v32, %v369_v46  ;;  %v371_v53 = vpop.f32.mrb[11].mxu1 }
 0x15c   :  { %v463_v57 = vmax.f32 %v461_v29, %v462_v42  ;;  %v487_v58 = vmax.f32 %v254_v37, %v258_v50  ;;  %v477_v59 = vmax.f32 %v475_v31, %v476_v45  ;;  %v501_v60 = vmax.f32 %v367_v40, %v371_v53 }
 0x15d   :  { %v457_v62 = vrot.slane %v456_v48, 1  ;;  %v481_v63 = vrot.slane %v480_v49, 4  ;;  %v471_v0 = vrot.slane %v470_v51, 1  ;;  %v495_v1 = vrot.slane %v494_v52, 4 }
 0x15e   :  { %v464_v2 = vrot.slane %v463_v57, 1  ;;  %v488_v3 = vrot.slane %v487_v58, 4  ;;  %v478_v4 = vrot.slane %v477_v59, 1  ;;  %v502_v5 = vrot.slane %v501_v60, 4 }
 0x15f   :  { %v458_v6 = vmax.f32 %v456_v48, %v457_v62  ;;  %v482_v7 = vmax.f32 %v480_v49, %v481_v63  ;;  %v472_v8 = vmax.f32 %v470_v51, %v471_v0  ;;  %v496_v9 = vmax.f32 %v494_v52, %v495_v1 }
 0x160   :  { %v465_v10 = vmax.f32 %v463_v57, %v464_v2  ;;  %v489_v11 = vmax.f32 %v487_v58, %v488_v3  ;;  %v262_v12 = vpop.f32.mrb[12].mxu0  ;;  %v479_v13 = vmax.f32 %v477_v59, %v478_v4  ;;  %v503_v14 = vmax.f32 %v501_v60, %v502_v5  ;;  %v375_v15 = vpop.f32.mrb[12].mxu1 }
 0x161   :  { %v693_v16 = vsel %vm692_vm2, %v458_v6, %v430_v35  ;;  %v483_v17 = vrot.slane %v482_v7, 2  ;;  %v264_v18 = vpop.f32.mrb[13].mxu0  ;;  %v713_v19 = vsel %vm692_vm2, %v472_v8, %v444_v38  ;;  %v497_v20 = vrot.slane %v496_v9, 2  ;;  %v377_v21 = vpop.f32.mrb[13].mxu1 }
 0x162   :  { %v706_v23 = vsel %vm692_vm2, %v465_v10, %v437_v41  ;;  %v490_v24 = vrot.slane %v489_v11, 2  ;;  %v266_v25 = vpop.f32.mrb[14].mxu0  ;;  %v720_v26 = vsel %vm692_vm2, %v479_v13, %v451_v44  ;;  %v504_v27 = vrot.slane %v503_v14, 2  ;;  %v379_v28 = vpop.f32.mrb[14].mxu1 }
 0x163   :  { %v484_v29 = vmax.f32 %v482_v7, %v483_v17  ;;  %v508_v30 = vmax.f32 %v262_v12, %v266_v25  ;;  %v268_v31 = vpop.f32.mrb[15].mxu0  ;;  %v498_v32 = vmax.f32 %v496_v9, %v497_v20  ;;  %v522_v36 = vmax.f32 %v375_v15, %v379_v28  ;;  %v381_v35 = vpop.f32.mrb[15].mxu1 }
 0x164   :  { %v491_v37 = vmax.f32 %v489_v11, %v490_v24  ;;  %v515_v39 = vmax.f32 %v264_v18, %v268_v31  ;;  %v505_v40 = vmax.f32 %v503_v14, %v504_v27  ;;  %v529_v38 = vmax.f32 %v377_v21, %v381_v35 }
 0x165   :  { %v485_v42 = vrot.slane %v484_v29, 1  ;;  %v509_v43 = vrot.slane %v508_v30, 4  ;;  %v499_v45 = vrot.slane %v498_v32, 1  ;;  %v523_v41 = vrot.slane %v522_v36, 4 }
 0x166   :  { %v492_v46 = vrot.slane %v491_v37, 1  ;;  %v516_v48 = vrot.slane %v515_v39, 4  ;;  %v506_v44 = vrot.slane %v505_v40, 1  ;;  %v530_v49 = vrot.slane %v529_v38, 4 }
 0x167   :  { %v486_v50 = vmax.f32 %v484_v29, %v485_v42  ;;  %v510_v51 = vmax.f32 %v508_v30, %v509_v43  ;;  %v500_v52 = vmax.f32 %v498_v32, %v499_v45  ;;  %v524_v53 = vmax.f32 %v522_v36, %v523_v41 }
 0x168   :  { %v493_v57 = vmax.f32 %v491_v37, %v492_v46  ;;  %v517_v58 = vmax.f32 %v515_v39, %v516_v48  ;;  %v272_v59 = vpop.f32.mrb[16].mxu0  ;;  %v507_v60 = vmax.f32 %v505_v40, %v506_v44  ;;  %v531_v62 = vmax.f32 %v529_v38, %v530_v49  ;;  %v385_v63 = vpop.f32.mrb[16].mxu1 }
 0x169   :  { %v695_v0 = vsel %vm694_vm3, %v486_v50, %v693_v16  ;;  %v511_v1 = vrot.slane %v510_v51, 2  ;;  %v274_v2 = vpop.f32.mrb[17].mxu0  ;;  %v714_v3 = vsel %vm694_vm3, %v500_v52, %v713_v19  ;;  %v525_v4 = vrot.slane %v524_v53, 2  ;;  %v387_v5 = vpop.f32.mrb[17].mxu1 }
 0x16a   :  { %v707_v6 = vsel %vm694_vm3, %v493_v57, %v706_v23  ;;  %v518_v7 = vrot.slane %v517_v58, 2  ;;  %v276_v8 = vpop.f32.mrb[18].mxu0  ;;  %v721_v9 = vsel %vm694_vm3, %v507_v60, %v720_v26  ;;  %v532_v10 = vrot.slane %v531_v62, 2  ;;  %v389_v11 = vpop.f32.mrb[18].mxu1 }
 0x16b   :  { %v512_v12 = vmax.f32 %v510_v51, %v511_v1  ;;  %v536_v13 = vmax.f32 %v272_v59, %v276_v8  ;;  %v278_v14 = vpop.f32.mrb[19].mxu0  ;;  %v526_v15 = vmax.f32 %v524_v53, %v525_v4  ;;  %v550_v17 = vmax.f32 %v385_v63, %v389_v11  ;;  %v391_v16 = vpop.f32.mrb[19].mxu1 }
 0x16c   :  { %v519_v18 = vmax.f32 %v517_v58, %v518_v7  ;;  %v543_v20 = vmax.f32 %v274_v2, %v278_v14  ;;  %v533_v21 = vmax.f32 %v531_v62, %v532_v10  ;;  %v557_v19 = vmax.f32 %v387_v5, %v391_v16 }
 0x16d   :  { %v513_v24 = vrot.slane %v512_v12, 1  ;;  %v537_v25 = vrot.slane %v536_v13, 4  ;;  %v527_v27 = vrot.slane %v526_v15, 1  ;;  %v551_v23 = vrot.slane %v550_v17, 4 }
 0x16e   :  { %v520_v28 = vrot.slane %v519_v18, 1  ;;  %v544_v29 = vrot.slane %v543_v20, 4  ;;  %v534_v26 = vrot.slane %v533_v21, 1  ;;  %v558_v30 = vrot.slane %v557_v19, 4 }
 0x16f   :  { %v514_v31 = vmax.f32 %v512_v12, %v513_v24  ;;  %v538_v32 = vmax.f32 %v536_v13, %v537_v25  ;;  %v528_v36 = vmax.f32 %v526_v15, %v527_v27  ;;  %v552_v35 = vmax.f32 %v550_v17, %v551_v23 }
 0x170   :  { %v521_v37 = vmax.f32 %v519_v18, %v520_v28  ;;  %v545_v39 = vmax.f32 %v543_v20, %v544_v29  ;;  %v282_v40 = vpop.f32.mrb[20].mxu0  ;;  %v535_v38 = vmax.f32 %v533_v21, %v534_v26  ;;  %v559_v42 = vmax.f32 %v557_v19, %v558_v30  ;;  %v395_v43 = vpop.f32.mrb[20].mxu1 }
 0x171   :  { %v697_v45 = vsel %vm696_vm4, %v514_v31, %v695_v0  ;;  %v539_v41 = vrot.slane %v538_v32, 2  ;;  %v284_v46 = vpop.f32.mrb[21].mxu0  ;;  %v715_v48 = vsel %vm696_vm4, %v528_v36, %v714_v3  ;;  %v553_v44 = vrot.slane %v552_v35, 2  ;;  %v397_v49 = vpop.f32.mrb[21].mxu1 }
 0x172   :  { %v708_v50 = vsel %vm696_vm4, %v521_v37, %v707_v6  ;;  %v546_v51 = vrot.slane %v545_v39, 2  ;;  %v286_v52 = vpop.f32.mrb[22].mxu0  ;;  %v722_v53 = vsel %vm696_vm4, %v535_v38, %v721_v9  ;;  %v560_v57 = vrot.slane %v559_v42, 2  ;;  %v399_v58 = vpop.f32.mrb[22].mxu1 }
 0x173   :  { %v540_v59 = vmax.f32 %v538_v32, %v539_v41  ;;  %v564_v60 = vmax.f32 %v282_v40, %v286_v52  ;;  %v288_v62 = vpop.f32.mrb[23].mxu0  ;;  %v554_v63 = vmax.f32 %v552_v35, %v553_v44  ;;  %v578_v1 = vmax.f32 %v395_v43, %v399_v58  ;;  %v401_v0 = vpop.f32.mrb[23].mxu1 }
 0x174   :  { %v547_v2 = vmax.f32 %v545_v39, %v546_v51  ;;  %v571_v4 = vmax.f32 %v284_v46, %v288_v62  ;;  %v561_v5 = vmax.f32 %v559_v42, %v560_v57  ;;  %v585_v3 = vmax.f32 %v397_v49, %v401_v0 }
 0x175   :  { %v541_v7 = vrot.slane %v540_v59, 1  ;;  %v565_v8 = vrot.slane %v564_v60, 4  ;;  %v555_v10 = vrot.slane %v554_v63, 1  ;;  %v579_v6 = vrot.slane %v578_v1, 4 }
 0x176   :  { %v548_v11 = vrot.slane %v547_v2, 1  ;;  %v572_v12 = vrot.slane %v571_v4, 4  ;;  %v562_v9 = vrot.slane %v561_v5, 1  ;;  %v586_v13 = vrot.slane %v585_v3, 4 }
 0x177   :  { %v542_v14 = vmax.f32 %v540_v59, %v541_v7  ;;  %v566_v15 = vmax.f32 %v564_v60, %v565_v8  ;;  %v556_v17 = vmax.f32 %v554_v63, %v555_v10  ;;  %v580_v16 = vmax.f32 %v578_v1, %v579_v6 }
 0x178   :  { %v549_v18 = vmax.f32 %v547_v2, %v548_v11  ;;  %v573_v20 = vmax.f32 %v571_v4, %v572_v12  ;;  %v563_v21 = vmax.f32 %v561_v5, %v562_v9  ;;  %v292_v19 = vpop.f32.mrb[24].mxu0  ;;  %v587_v24 = vmax.f32 %v585_v3, %v586_v13  ;;  %v405_v25 = vpop.f32.mrb[24].mxu1 }
 0x179   :  { %v699_v27 = vsel %vm698_vm5, %v542_v14, %v697_v45  ;;  %v567_v23 = vrot.slane %v566_v15, 2  ;;  %v716_v28 = vsel %vm698_vm5, %v556_v17, %v715_v48  ;;  %v294_v29 = vpop.f32.mrb[25].mxu0  ;;  %v581_v26 = vrot.slane %v580_v16, 2  ;;  %v407_v30 = vpop.f32.mrb[25].mxu1 }
 0x17a   :  { %v709_v31 = vsel %vm698_vm5, %v549_v18, %v708_v50  ;;  %v574_v32 = vrot.slane %v573_v20, 2  ;;  %v723_v36 = vsel %vm698_vm5, %v563_v21, %v722_v53  ;;  %v296_v35 = vpop.f32.mrb[26].mxu0  ;;  %v588_v37 = vrot.slane %v587_v24, 2  ;;  %v409_v39 = vpop.f32.mrb[26].mxu1 }
 0x17b   :  { %v568_v40 = vmax.f32 %v566_v15, %v567_v23  ;;  %v592_v38 = vmax.f32 %v292_v19, %v296_v35  ;;  %v582_v42 = vmax.f32 %v580_v16, %v581_v26  ;;  %v298_v43 = vpop.f32.mrb[27].mxu0  ;;  %v606_v41 = vmax.f32 %v405_v25, %v409_v39  ;;  %v411_v45 = vpop.f32.mrb[27].mxu1 }
 0x17c   :  { %v575_v46 = vmax.f32 %v573_v20, %v574_v32  ;;  %v599_v44 = vmax.f32 %v294_v29, %v298_v43  ;;  %v589_v48 = vmax.f32 %v587_v24, %v588_v37  ;;  %v613_v49 = vmax.f32 %v407_v30, %v411_v45 }
 0x17d   :  { %v569_v51 = vrot.slane %v568_v40, 1  ;;  %v593_v52 = vrot.slane %v592_v38, 4  ;;  %v583_v57 = vrot.slane %v582_v42, 1  ;;  %v607_v50 = vrot.slane %v606_v41, 4 }
 0x17e   :  { %v576_v58 = vrot.slane %v575_v46, 1  ;;  %v600_v53 = vrot.slane %v599_v44, 4  ;;  %v590_v59 = vrot.slane %v589_v48, 1  ;;  %v614_v60 = vrot.slane %v613_v49, 4 }
 0x17f   :  { %v570_v62 = vmax.f32 %v568_v40, %v569_v51  ;;  %v594_v63 = vmax.f32 %v592_v38, %v593_v52  ;;  %v584_v1 = vmax.f32 %v582_v42, %v583_v57  ;;  %v608_v0 = vmax.f32 %v606_v41, %v607_v50 }
 0x180   :  { %v577_v2 = vmax.f32 %v575_v46, %v576_v58  ;;  %v601_v4 = vmax.f32 %v599_v44, %v600_v53  ;;  %v591_v5 = vmax.f32 %v589_v48, %v590_v59  ;;  %v615_v3 = vmax.f32 %v613_v49, %v614_v60  ;;  %v302_v7 = vpop.f32.mrb[28].mxu0  ;;  %v415_v8 = vpop.f32.mrb[28].mxu1 }
 0x181   :  { %v701_v10 = vsel %vm700_vm6, %v570_v62, %v699_v27  ;;  %v595_v6 = vrot.slane %v594_v63, 2  ;;  %v717_v11 = vsel %vm700_vm6, %v584_v1, %v716_v28  ;;  %v609_v12 = vrot.slane %v608_v0, 2  ;;  %v304_v9 = vpop.f32.mrb[29].mxu0  ;;  %v417_v13 = vpop.f32.mrb[29].mxu1  ;;  %v2547_v62 = vld [vmem:[#allocation9] sm:$0x3] }
 0x182   :  { %v710_v14 = vsel %vm700_vm6, %v577_v2, %v709_v31  ;;  %v602_v15 = vrot.slane %v601_v4, 2  ;;  %v724_v17 = vsel %vm700_vm6, %v591_v5, %v723_v36  ;;  %v616_v16 = vrot.slane %v615_v3, 2  ;;  %v306_v18 = vpop.f32.mrb[30].mxu0  ;;  %v419_v20 = vpop.f32.mrb[30].mxu1  ;;  %v746_v5 = vld [vmem:[#allocation6] sm:$0xf] }
 0x183   :  { %v596_v21 = vmax.f32 %v594_v63, %v595_v6  ;;  %v610_v19 = vmax.f32 %v608_v0, %v609_v12  ;;  %v620_v24 = vmax.f32 %v302_v7, %v306_v18  ;;  %v634_v25 = vmax.f32 %v415_v8, %v419_v20  ;;  %v308_v23 = vpop.f32.mrb[31].mxu0  ;;  %v421_v27 = vpop.f32.mrb[31].mxu1 }
 0x184   :  { %v603_v29 = vmax.f32 %v601_v4, %v602_v15  ;;  %v617_v26 = vmax.f32 %v615_v3, %v616_v16  ;;  %v627_v28 = vmax.f32 %v304_v9, %v308_v23  ;;  %v641_v30 = vmax.f32 %v417_v13, %v421_v27 }
 0x185   :  { %v597_v32 = vrot.slane %v596_v21, 1  ;;  %v611_v35 = vrot.slane %v610_v19, 1  ;;  %v621_v37 = vrot.slane %v620_v24, 4  ;;  %v635_v31 = vrot.slane %v634_v25, 4 }
 0x186   :  { %v604_v39 = vrot.slane %v603_v29, 1  ;;  %v618_v40 = vrot.slane %v617_v26, 1  ;;  %v628_v36 = vrot.slane %v627_v28, 4  ;;  %v642_v38 = vrot.slane %v641_v30, 4 }
 0x187   :  { %v598_v42 = vmax.f32 %v596_v21, %v597_v32  ;;  %v612_v43 = vmax.f32 %v610_v19, %v611_v35  ;;  %v622_v41 = vmax.f32 %v620_v24, %v621_v37  ;;  %v636_v45 = vmax.f32 %v634_v25, %v635_v31 }
 0x188   :  { %v605_v46 = vmax.f32 %v603_v29, %v604_v39  ;;  %v619_v44 = vmax.f32 %v617_v26, %v618_v40  ;;  %v629_v48 = vmax.f32 %v627_v28, %v628_v36  ;;  %v643_v49 = vmax.f32 %v641_v30, %v642_v38 }
 0x189   :  { %v703_v51 = vsel %vm702_vm7, %v598_v42, %v701_v10  ;;  %v718_v52 = vsel %vm702_vm7, %v612_v43, %v717_v11  ;;  %v623_v57 = vrot.slane %v622_v41, 2  ;;  %v637_v50 = vrot.slane %v636_v45, 2  ;;  %v2034_v43 = vld [vmem:[%s2691_s6] ss:$8 sps:$4 sm:$0xff]  }
 0x18a   :  { %v630_v58 = vrot.slane %v629_v48, 2  ;;  %v644_v53 = vrot.slane %v643_v49, 2  ;;  %v711_v59 = vsel %vm702_vm7, %v605_v46, %v710_v14  ;;  %v725_v60 = vsel %vm702_vm7, %v619_v44, %v724_v17  ;;  %v2039_v46 = vld [vmem:[%s2691_s6 + $0x14] ss:$8 sps:$4 sm:$0xff]   ;;  %v2037_v44 = vld [vmem:[%s2691_s6 + $0x10] ss:$8 sps:$4 sm:$0xff]  }
 0x18b   :  { %v624_v63 = vmax.f32 %v622_v41, %v623_v57  ;;  %v638_v1 = vmax.f32 %v636_v45, %v637_v50  ;;  %v2550_v0 = vsub.s32 0, %v2500_v47  ;;  %v762_v3 = vsub.s32 3, %v2500_v47  ;;  %v2048_v57 = vld [vmem:[%s2691_s6 + $0x44] ss:$8 sps:$4 sm:$0xff]   ;;  %v2046_v50 = vld [vmem:[%s2691_s6 + $0x40] ss:$8 sps:$4 sm:$0xff]  }
 0x18c   :  { %v631_v2 = vmax.f32 %v629_v48, %v630_v58  ;;  %v645_v4 = vmax.f32 %v643_v49, %v644_v53  ;;  %v758_v7 = vsub.s32 2, %v2500_v47  ;;  %v826_v6 = vrot.slane %v2547_v62, %v2509_v61  ;;  %v2042_v48 = vld [vmem:[%s2691_s6 + $0x24] ss:$8 sps:$4 sm:$0xff]   ;;  %v2040_v49 = vld [vmem:[%s2691_s6 + $0x20] ss:$8 sps:$4 sm:$0xff]  }
 0x18d   :  { %v625_v8 = vrot.slane %v624_v63, 1  ;;  %v639_v10 = vrot.slane %v638_v1, 1  ;;  %v816_v11 = vadd.f32 %v2521_v34, %v2518_v33  ;;  %v751_v15 = vrot.slane %v746_v5, %v2550_v0  ;;  %v2051_v58 = vld [vmem:[%s2691_s6 + $0x54] ss:$8 sps:$4 sm:$0xff]   ;;  %v2049_v53 = vld [vmem:[%s2691_s6 + $0x50] ss:$8 sps:$4 sm:$0xff]  }
 0x18e   :  { %v632_v12 = vrot.slane %v631_v2, 1  ;;  %v646_v9 = vrot.slane %v645_v4, 1  ;;  %v755_v18 = vrot.slane %v746_v5, %v2509_v61  ;;  %v759_v47 = vrot.slane %v746_v5, %v758_v7  ;;  %v2066_v7 = vld [vmem:[%s2691_s6 + $0xa4] ss:$8 sps:$4 sm:$0xff]  }
 0x18f   :  { %v626_v13 = vmax.f32 %v624_v63, %v625_v8  ;;  %v640_v14 = vmax.f32 %v638_v1, %v639_v10  ;;  %v763_v19 = vrot.slane %v746_v5, %v762_v3  ;;  %v830_v24 = vadd.f32 %v826_v6, %v816_v11  ;;  %v2057_v63 = vld [vmem:[%s2691_s6 + $0x74] ss:$8 sps:$4 sm:$0xff]   ;;  %v2055_v1 = vld [vmem:[%s2691_s6 + $0x70] ss:$8 sps:$4 sm:$0xff]   ;;  %v2064_v8 = vld [vmem:[%s2691_s6 + $0xa0] ss:$8 sps:$4 sm:$0xff]  }
 0x190   :  { %v633_v17 = vmax.f32 %v631_v2, %v632_v12  ;;  %v647_v16 = vmax.f32 %v645_v4, %v646_v9  ;;  %v2060_v2 = vld [vmem:[%s2691_s6 + $0x84] ss:$8 sps:$4 sm:$0xff]   ;;  %v2058_v4 = vld [vmem:[%s2691_s6 + $0x80] ss:$8 sps:$4 sm:$0xff]   ;;  %v2063_v5 = vld [vmem:[%s2691_s6 + $0x94] ss:$8 sps:$4 sm:$0xff]   ;;  %v787_v11 = vrot.slane %v2502_v54, %v2550_v0  ;;  %v806_v12 = vrot.slane %v2506_v56, %v2550_v0 }
 0x191   :  { %v705_v20 = vsel %vm704_vm8, %v626_v13, %v703_v51  ;;  %v719_v21 = vsel %vm704_vm8, %v640_v14, %v718_v52  ;;  %v832_v35 = vmax.f32 %v830_v24, 0.0  ;;  %v2045_v51 = vld [vmem:[%s2691_s6 + $0x34] ss:$8 sps:$4 sm:$0xff]   ;;  %v2043_v52 = vld [vmem:[%s2691_s6 + $0x30] ss:$8 sps:$4 sm:$0xff]  }
 0x192   :  { %v731_v25 = vmax.f32 %v705_v20, -3.4028235e+38  ;;  %v733_v33 = vmax.f32 %v719_v21, -3.4028235e+38  ;;  %v712_v34 = vsel %vm704_vm8, %v633_v17, %v711_v59  ;;  %v726_v23 = vsel %vm704_vm8, %v647_v16, %v725_v60  ;;  %v2054_v59 = vld [vmem:[%s2691_s6 + $0x64] ss:$8 sps:$4 sm:$0xff]  }
 0x193   :  { %v732_v27 = vmax.f32 %v712_v34, -3.4028235e+38  ;;  %v734_v29 = vmax.f32 %v726_v23, -3.4028235e+38  ;;  %v834_v41 = vpack.c.bf16 %v832_v35, %v832_v35  ;;  %v2052_v60 = vld [vmem:[%s2691_s6 + $0x60] ss:$8 sps:$4 sm:$0xff]   ;;  %v794_v14 = vmul.f32 %v787_v11, %v2504_v55 }
 0x194   :  { %v768_v26 = vadd.f32 %v751_v15, %v731_v25  ;;  %v770_v28 = vadd.f32 %v759_v47, %v733_v33  ;;  %v2061_v3 = vld [vmem:[%s2691_s6 + $0x90] ss:$8 sps:$4 sm:$0xff]   ;;  %v2069_v10 = vld [vmem:[%s2691_s6 + $0xb4] ss:$8 sps:$4 sm:$0xff]   ;;  %v2072_v9 = vld [vmem:[%s2691_s6 + $0xc4] ss:$8 sps:$4 sm:$0xff]   ;;  %v813_v15 = vmul.f32 %v806_v12, %v2515_v22  ;;  %v822_v17 = vrot.slane %v2547_v62, %v2550_v0 }
 0x195   :  { %v769_v30 = vadd.f32 %v755_v18, %v732_v27  ;;  %v771_v32 = vadd.f32 %v763_v19, %v734_v29  ;;  %v2067_v6 = vld [vmem:[%s2691_s6 + $0xb0] ss:$8 sps:$4 sm:$0xff]   ;;  %v2070_v13 = vld [vmem:[%s2691_s6 + $0xc0] ss:$8 sps:$4 sm:$0xff]   ;;  %v2075_v54 = vld [vmem:[%s2691_s6 + $0xd4] ss:$8 sps:$4 sm:$0xff]  }
 0x196   :  { %v772_v37 = vmax.f32 %v768_v26, 0.0  ;;  %v774_v31 = vmax.f32 %v770_v28, 0.0  ;;  %v2073_v56 = vld [vmem:[%s2691_s6 + $0xd0] ss:$8 sps:$4 sm:$0xff]   ;;  %v815_v16 = vadd.f32 %v813_v15, %v794_v14  ;;  %v2078_v55 = vld [vmem:[%s2691_s6 + $0xe4] ss:$8 sps:$4 sm:$0xff]  }
 0x197   :  { %v773_v39 = vmax.f32 %v769_v30, 0.0  ;;  %v775_v40 = vmax.f32 %v771_v32, 0.0  ;;  %v2076_v22 = vld [vmem:[%s2691_s6 + $0xe0] ss:$8 sps:$4 sm:$0xff]   ;;  %v2081_v47 = vld [vmem:[%s2691_s6 + $0xf4] ss:$8 sps:$4 sm:$0xff]  }
 0x198   :  { %v869_v36 = vpack.c.bf16 %v774_v31, %v774_v31  ;;  %v867_v45 = vpack.c.bf16 %v772_v37, %v772_v37  ;;  %v829_v18 = vadd.f32 %v822_v17, %v815_v16  ;;  %v2079_v62 = vld [vmem:[%s2691_s6 + $0xf0] ss:$8 sps:$4 sm:$0xff]   ;;  %v2088_v27 = vld [vmem:[#allocation12 + $0x58] sm:$0xff]  }
 0x199   :  { %v868_v38 = vpack.c.bf16 %v773_v39, %v773_v39  ;;  %v870_v42 = vpack.c.bf16 %v775_v40, %v775_v40  ;;  %v2082_v19 = vld [vmem:[#allocation12 + $0x40] sm:$0xff]   ;;  %v2084_v25 = vld [vmem:[#allocation12 + $0x48] sm:$0xff]   ;;  %v2086_v34 = vld [vmem:[#allocation12 + $0x50] sm:$0xff]  }
 0x19a   :  { %v831_v20 = vmax.f32 %v829_v18, 0.0  ;;  %v2083_v24 = vld [vmem:[#allocation12] sm:$0xff]   ;;  %1893 = vmatprep.subr.bf16.mxu1 %v2082_v19  ;;  %v2085_v33 = vld [vmem:[#allocation12 + $0x8] sm:$0xff]   ;;  %v2087_v23 = vld [vmem:[#allocation12 + $0x10] sm:$0xff]  }
 0x19b   :  { %1287 = vmatprep.mubr.bf16.mxu0 %v868_v38  ;;  %1328 = vmatprep.mubr.bf16.mxu1 %v870_v42  ;;  %v2089_v29 = vld [vmem:[#allocation12 + $0x18] sm:$0xff]   ;;  %v2090_v26 = vld [vmem:[#allocation12 + $0x60] sm:$0xff]   ;;  %v2092_v30 = vld [vmem:[#allocation12 + $0x68] sm:$0xff]  }
 0x19c   :  { %1288 = vmatmul.mubr.bf16.vlgmr.msra.gmra.mrb[32].mxu0 %v867_v45  ;;  %1329 = vmatmul.mubr.bf16.vlgmr.msra.gmra.mrb[32].mxu1 %v869_v36  ;;  %v833_v21 = vpack.c.bf16 %v831_v20, %v831_v20  ;;  %v2091_v28 = vld [vmem:[#allocation12 + $0x20] sm:$0xff]   ;;  %v2093_v32 = vld [vmem:[#allocation12 + $0x28] sm:$0xff]   ;;  %v2094_v35 = vld [vmem:[#allocation12 + $0x70] sm:$0xff]  }
 0x19d   :  { %1498 = vmatpush1.bf16.msra.mxu0 %v2034_v43  ;;  %1529 = vmatprep.mubr.bf16.mxu0 %v834_v41  ;;  %v2095_v37 = vld [vmem:[#allocation12 + $0x30] sm:$0xff]   ;;  %v2096_v31 = vld [vmem:[#allocation12 + $0x78] sm:$0xff]  }
 0x19e   :  { %1499 = vmatprep.subr.bf16.mxu0 %v2039_v46  ;;  %1894 = vmatpush3.bf16.msra.mxu1 %v2083_v24  ;;  %v2097_v39 = vld [vmem:[#allocation12 + $0x38] sm:$0xff]  }
 0x19f   :  { %1895 = vmatprep.subr.bf16.mxu1 %v2084_v25 }
 0x1a1   :  { %1500 = vmatpush1.bf16.msra.mxu0 %v2037_v44 }
 0x1a2   :  { %1501 = vmatprep.subr.bf16.mxu0 %v2042_v48  ;;  %1896 = vmatpush3.bf16.msra.mxu1 %v2085_v33 }
 0x1a3   :  { %1897 = vmatprep.subr.bf16.mxu1 %v2086_v34 }
 0x1a5   :  { %1502 = vmatpush1.bf16.msra.mxu0 %v2040_v49  ;;  %v1538_v49 = vld [vmem:[%s2693_s8] sm:$0x3] }
 0x1a6   :  { %1503 = vmatprep.subr.bf16.mxu0 %v2045_v51  ;;  %1898 = vmatpush3.bf16.msra.mxu1 %v2087_v23  ;;  %v1543_v51 = vrot.slane %v1538_v49, %v2550_v0  ;;  %v1875_v0 = vld [vmem:[%s2695_s10] ss:$0 sm:$0xff] }
 0x1a7   :  { %1899 = vmatprep.subr.bf16.mxu1 %v2088_v27 }
 0x1a9   :  { %1504 = vmatpush1.bf16.msra.mxu0 %v2043_v52 }
 0x1aa   :  { %1505 = vmatprep.subr.bf16.mxu0 %v2048_v57  ;;  %1900 = vmatpush3.bf16.msra.mxu1 %v2089_v29  ;;  %v1547_v57 = vrot.slane %v1538_v49, %v2509_v61 }
 0x1ab   :  { %1901 = vmatprep.subr.bf16.mxu1 %v2090_v26 }
 0x1ad   :  { %1506 = vmatpush1.bf16.msra.mxu0 %v2046_v50 }
 0x1ae   :  { %1507 = vmatprep.subr.bf16.mxu0 %v2051_v58  ;;  %1902 = vmatpush3.bf16.msra.mxu1 %v2091_v28 }
 0x1af   :  { %1903 = vmatprep.subr.bf16.mxu1 %v2092_v30 }
 0x1b1   :  { %1508 = vmatpush1.bf16.msra.mxu0 %v2049_v53 }
 0x1b2   :  { %1509 = vmatprep.subr.bf16.mxu0 %v2054_v59  ;;  %1904 = vmatpush3.bf16.msra.mxu1 %v2093_v32 }
 0x1b3   :  { %1905 = vmatprep.subr.bf16.mxu1 %v2094_v35 }
 0x1b5   :  { %1510 = vmatpush1.bf16.msra.mxu0 %v2052_v60 }
 0x1b6   :  { %1511 = vmatprep.subr.bf16.mxu0 %v2057_v63  ;;  %1906 = vmatpush3.bf16.msra.mxu1 %v2095_v37 }
 0x1b7   :  { %1907 = vmatprep.subr.bf16.mxu1 %v2096_v31 }
 0x1b9   :  { %1512 = vmatpush1.bf16.msra.mxu0 %v2055_v1 }
 0x1ba   :  { %1513 = vmatprep.subr.bf16.mxu0 %v2060_v2  ;;  %1908 = vmatpush3.bf16.msra.mxu1 %v2097_v39 }
 0x1bd   :  { %1514 = vmatpush1.bf16.msra.mxu0 %v2058_v4 }
 0x1be   :  { %1515 = vmatprep.subr.bf16.mxu0 %v2063_v5 }
 0x1c1   :  { %1516 = vmatpush1.bf16.msra.mxu0 %v2061_v3 }
 0x1c2   :  { %1517 = vmatprep.subr.bf16.mxu0 %v2066_v7 }
 0x1c5   :  { %1518 = vmatpush1.bf16.msra.mxu0 %v2064_v8 }
 0x1c6   :  { %1519 = vmatprep.subr.bf16.mxu0 %v2069_v10 }
 0x1c9   :  { %1520 = vmatpush1.bf16.msra.mxu0 %v2067_v6 }
 0x1ca   :  { %1521 = vmatprep.subr.bf16.mxu0 %v2072_v9 }
 0x1cd   :  { %1522 = vmatpush1.bf16.msra.mxu0 %v2070_v13 }
 0x1ce   :  { %1523 = vmatprep.subr.bf16.mxu0 %v2075_v54 }
 0x1d1   :  { %1524 = vmatpush1.bf16.msra.mxu0 %v2073_v56 }
 0x1d2   :  { %1525 = vmatprep.subr.bf16.mxu0 %v2078_v55 }
 0x1d5   :  { %1526 = vmatpush1.bf16.msra.mxu0 %v2076_v22 }
 0x1d6   :  { %1527 = vmatprep.subr.bf16.mxu0 %v2081_v47 }
 0x1d9   :  { %1528 = vmatpush1.bf16.msra.mxu0 %v2079_v62 }
 0x1dc   :  { %1530 = vmatmul.mubr.bf16.vlgmr.msra.gmra.mrb[36].mxu0 %v833_v21 }
 0x26f   :  { %v1289_v40 = vpop.f32.mrb[32].mxu0  ;;  %v1330_v36 = vpop.f32.mrb[32].mxu1 }
 0x270   :  { %v1331_v38 = vadd.f32 %v1330_v36, %v1289_v40  ;;  %v1291_v42 = vpop.f32.mrb[33].mxu0  ;;  %v1332_v43 = vpop.f32.mrb[33].mxu1 }
 0x271   :  { %v1333_v41 = vadd.f32 %v1332_v43, %v1291_v42  ;;  %v1293_v45 = vpop.f32.mrb[34].mxu0  ;;  %v1334_v46 = vpop.f32.mrb[34].mxu1 }
 0x272   :  { %v1294_v44 = vpop.f32.mrb[35].mxu0  ;;  %v1335_v48 = vpop.f32.mrb[35].mxu1 }
 0x2af   :  { %v1531_v52 = vpop.f32.mrb[36].mxu0 }
 0x2b0   :  { %v1532_v50 = vadd.f32 %v1531_v52, %v1331_v38  ;;  %v1533_v58 = vpop.f32.mrb[37].mxu0 }
 0x2b1   :  { %v1534_v53 = vadd.f32 %v1533_v58, %v1333_v41  ;;  %v1535_v59 = vpop.f32.mrb[38].mxu0 }
 0x2b2   :  { %v1550_v60 = vadd.f32 %v1543_v51, %v1532_v50  ;;  %v1536_v63 = vpop.f32.mrb[39].mxu0 }
 0x2b3   :  { %v1551_v1 = vadd.f32 %v1547_v57, %v1534_v53 }
 0x2b4   :  { %v1552_v2 = vmax.f32 %v1550_v60, 0.0 }
 0x2b5   :  { %v1553_v4 = vmax.f32 %v1551_v1, 0.0 }
 0x2b6   :  { %v1554_v3 = vpack.c.bf16 %v1552_v2, %v1552_v2 }
 0x2b7   :  { %v1555_v5 = vpack.c.bf16 %v1553_v4, %v1553_v4 }
 0x2b9   :  { %1723 = vmatprep.mubr.bf16.mxu1 %v1555_v5 }
 0x2ba   :  { %1724 = vmatmul.mubr.bf16.vlgmr.msra.gmra.mrb[36].mxu1 %v1554_v3 }
 0x38d   :  { %v1909_v7 = vpop.f32.mrb[36].mxu1 }
 0x38e   :  { %v1910_v8 = vpop.f32.mrb[37].mxu1 }
 0x38f   :  { %v1911_v61 = vadd.f32 %v1910_v8, %v1909_v7  ;;  %v1912_v10 = vpop.f32.mrb[38].mxu1 }
 0x390   :  { %v1913_v6 = vpop.f32.mrb[39].mxu1 }
 0x391   :  { %v1726_v11 = vadd.f32 %v1911_v61, %v1875_v0 }
 0x393   :  { %v1892_v12 = vmul.f32 -1.442695, %v1726_v11 }
 0x395   :  { %2098 = vpow2.f32 %v1892_v12 }
 0x39f   :  { %v2099_v9 = vpop.eup %2098 }
 0x3a0   :  { %v1734_v13 = vadd.f32 1.0, %v2099_v9 }
 0x3a2   :  { %2100 = vrcp.f32 %v1734_v13 }
 0x3ac   :  { %v2101_v14 = vpop.eup %2100 }
 0x3ad   :  { %v1737_v15 = vmul.f32 2.0, %v2101_v14 }
 0x3af   :  { %1738 = vst [vmem:[#allocation14] sm:$0xff] %v1737_v15 }
 0x3b0   :  { %2245 = shalt.err (!%p2242_p10)
}
 0x3b1   :  { %s2246_s19 = scalar_lea.hbm %s2696_s11, 128 }
 0x3b2   :  { %p2247_p11 = scmp.ne.s32.totalorder %s2696_s11, %s2246_s19  ;;  %p2250_p12 = scmp.lt.u32.totalorder %s2246_s19, %s2696_s11 }
 0x3b4   :  { %p2252_p13 = pnand %p2250_p12, %p2247_p11 }
 0x3b6   :  { %2255 = shalt.err (!%p2252_p13)
}
 0x3b7   :  { %1748 = dma.vmem_to_hbm [thread:$0]  %s1746_s23, 128, %s2696_s11, [#allocation5]  }
 0x3b8   :  { %2264 = dma.done.wait [#allocation5], 128  }
 0x3b9   :  { %2265 = vsyncadd [#allocation5], 4294967168 }
 0x3ba   :  { %1752 = vsyncpa [#allocation4], 1 }
 0x3bb   :  { %1753 = vsyncpa [#allocation7], 1 }
 0x3bc   :  { %1754 = vsyncpa [#allocation10], 1 }
 0x3bd   :  { %1755 = vsyncpa [#allocation13], 1 }
 0x3be   :  { %1756 = vsyncpa [#allocation5], 1 }

</bundles_post_ra>
